<compile_context>
chip_gen: v7x
topology: tpu7x:2x2x1
jax: 0.10.0
libtpu: 0.0.40
codegen_flags: <defaults>
</compile_context>

<pallas_src>
import math
import functools

import jax
import jax.numpy as jnp
from jax.experimental import pallas as pl
from jax.experimental.pallas import tpu as pltpu


# ----------------------------- in-kernel helpers -----------------------------
def _layer_norm(x, w, b, eps=1e-5):
    mu = jnp.mean(x, axis=-1, keepdims=True)
    xc = x - mu
    var = jnp.mean(xc * xc, axis=-1, keepdims=True)
    return xc * jax.lax.rsqrt(var + eps) * w + b


def _gelu_exact(x):
    # PyTorch F.gelu default (erf-based, exact).
    return 0.5 * x * (1.0 + jax.lax.erf(x * (1.0 / math.sqrt(2.0))))


# ----------------------- fused encoder-stack Pallas kernel -------------------
def _encoder_stack_kernel(x_ref, cond_ref, pe_ref, embw_ref, embb_ref,
                          wqkv_ref, bqkv_ref, wo_ref, bo_ref,
                          w1_ref, b1_ref, w2_ref, b2_ref,
                          ln1w_ref, ln1b_ref, ln2w_ref, ln2b_ref,
                          finw_ref, finb_ref,
                          o_ref, y_scr,
                          *, num_heads, n_cond, num_layers):
    layer = pl.program_id(0)
    B, S, D = y_scr.shape
    Sx = S - n_cond
    H = num_heads
    dh = D // H
    scale = 1.0 / math.sqrt(dh)
    bf16 = jnp.bfloat16

    # -- layer 0: fold input projection + positional embedding + cond concat
    @pl.when(layer == 0)
    def _():
        xin = x_ref[...].reshape(B * Sx, -1)
        emb = jnp.dot(xin.astype(bf16), embw_ref[...].astype(bf16),
                      preferred_element_type=jnp.float32) + embb_ref[...]
        emb = emb.reshape(B, Sx, D) + pe_ref[...][None, :, :]
        y_scr[...] = jnp.concatenate([cond_ref[...], emb], axis=1)

    x = y_scr[...]                          # (B, S, D) f32, VMEM-resident
    x2 = x.reshape(B * S, D)

    # -- self-attention: one QKV matmul, head-batched scores, one out-proj
    qkv = jnp.dot(x2.astype(bf16), wqkv_ref[0],
                  preferred_element_type=jnp.float32) + bqkv_ref[0]
    q = qkv[:, :D].reshape(B, S, D)
    k = qkv[:, D:2 * D].reshape(B, S, D)
    v = qkv[:, 2 * D:].reshape(B, S, D)

    heads = []
    for h in range(H):
        sl = slice(h * dh, (h + 1) * dh)
        s = jnp.einsum('bqd,bkd->bqk', q[..., sl].astype(bf16),
                       k[..., sl].astype(bf16),
                       preferred_element_type=jnp.float32) * scale
        s = s - jnp.max(s, axis=-1, keepdims=True)
        p = jnp.exp(s)
        p = p * pl.reciprocal(jnp.sum(p, axis=-1, keepdims=True), approx=True)
        heads.append(jnp.einsum('bqk,bkd->bqd', p.astype(bf16),
                                v[..., sl].astype(bf16),
                                preferred_element_type=jnp.float32))
    attn = jnp.concatenate(heads, axis=-1).reshape(B * S, D)
    attn = jnp.dot(attn.astype(bf16), wo_ref[0],
                   preferred_element_type=jnp.float32) + bo_ref[0]

    # residual + post-LN (PyTorch norm_first=False; dropout == identity)
    h1 = _layer_norm(x2 + attn, ln1w_ref[0], ln1b_ref[0])

    # feed-forward: Linear -> GELU(erf) -> Linear, residual + post-LN
    ff = jnp.dot(h1.astype(bf16), w1_ref[0],
                 preferred_element_type=jnp.float32) + b1_ref[0]
    ff = _gelu_exact(ff)
    ff = jnp.dot(ff.astype(bf16), w2_ref[0],
                 preferred_element_type=jnp.float32) + b2_ref[0]
    h2 = _layer_norm(h1 + ff, ln2w_ref[0], ln2b_ref[0])
    y_scr[...] = h2.reshape(B, S, D)

    # -- last layer: OutputProcess.poseFinal on the non-cond rows only
    @pl.when(layer == num_layers - 1)
    def _():
        yx = h2.reshape(B, S, D)[:, n_cond:, :].reshape(B * Sx, D)
        out = jnp.dot(yx.astype(bf16), finw_ref[...].astype(bf16),
                      preferred_element_type=jnp.float32) + finb_ref[...]
        o_ref[...] = out.reshape(B, Sx, -1)


def encoder_stack_forward(params, x, cond_emb, pe, *, num_heads):
    B, Sx, _ = x.shape
    _, n_cond, D = cond_emb.shape
    S = n_cond + Sx
    L = params["wqkv"].shape[0]
    Fout = params["final_w"].shape[1]

    def const_spec(a):
        return pl.BlockSpec(a.shape, lambda l: (0,) * a.ndim)

    def layer_spec(a):
        return pl.BlockSpec((1,) + a.shape[1:],
                            lambda l: (l,) + (0,) * (a.ndim - 1))

    const_args = (x, cond_emb, pe, params["emb_w"], params["emb_b"])
    layer_args = (params["wqkv"], params["bqkv"], params["wo"], params["bo"],
                  params["w1"], params["b1"], params["w2"], params["b2"],
                  params["ln1w"], params["ln1b"], params["ln2w"], params["ln2b"])
    tail_args = (params["final_w"], params["final_b"])

    kernel = functools.partial(_encoder_stack_kernel, num_heads=num_heads,
                               n_cond=n_cond, num_layers=L)
    return pl.pallas_call(
        kernel,
        out_shape=jax.ShapeDtypeStruct((B, Sx, Fout), jnp.float32),
        grid=(L,),
        in_specs=[const_spec(a) for a in const_args]
                + [layer_spec(a) for a in layer_args]
                + [const_spec(a) for a in tail_args],
        out_specs=pl.BlockSpec((B, Sx, Fout), lambda l: (0, 0, 0)),
        scratch_shapes=[pltpu.VMEM((B, S, D), jnp.float32)],
        compiler_params=pltpu.CompilerParams(
            dimension_semantics=("arbitrary",),
            vmem_limit_bytes=32 * 1024 * 1024),
    )(*const_args, *layer_args, *tail_args)


# ------------------------------ plain-JAX glue --------------------------------
def sine_position_embedding(S, D):
    # Standard sinusoidal PE (PositionEmbeddingSine1D not defined in snippet).
    pos = jnp.arange(S, dtype=jnp.float32)[:, None]
    div = jnp.exp(jnp.arange(0, D, 2, dtype=jnp.float32) * (-math.log(10000.0) / D))
    pe = jnp.zeros((S, D), jnp.float32)
    pe = pe.at[:, 0::2].set(jnp.sin(pos * div))
    pe = pe.at[:, 1::2].set(jnp.cos(pos * div))
    return pe


def timestep_frequency_embedding(t, dim, max_period=10000.0):
    half = dim // 2
    freqs = jnp.exp(-math.log(max_period) * jnp.arange(half, dtype=jnp.float32) / half)
    args = t.astype(jnp.float32)[:, None] * freqs[None, :]
    return jnp.concatenate([jnp.cos(args), jnp.sin(args)], axis=-1)


def init_params(key, *, input_size, output_size, latent_dim, ff_size,
                num_layers, freq_dim):
    D, F, L = latent_dim, ff_size, num_layers
    keys = iter(jax.random.split(key, 8))

    def w(shape, dtype=jnp.float32, scale=0.02):
        return (scale * jax.random.normal(next(keys), shape)).astype(dtype)

    bf16 = jnp.bfloat16
    return {
        # input / timestep / output projections (small, f32)
        "emb_w": w((input_size, D)), "emb_b": jnp.zeros((1, D), jnp.float32),
        "t_w1": w((freq_dim, D)), "t_b1": jnp.zeros((D,), jnp.float32),
        "t_w2": w((D, D)), "t_b2": jnp.zeros((D,), jnp.float32),
        "final_w": w((D, output_size)),
        "final_b": jnp.zeros((1, output_size), jnp.float32),
        # stacked per-layer encoder weights; MXU operands stored bf16
        "wqkv": w((L, D, 3 * D), bf16), "bqkv": jnp.zeros((L, 1, 3 * D), jnp.float32),
        "wo": w((L, D, D), bf16), "bo": jnp.zeros((L, 1, D), jnp.float32),
        "w1": w((L, D, F), bf16), "b1": jnp.zeros((L, 1, F), jnp.float32),
        "w2": w((L, F, D), bf16), "b2": jnp.zeros((L, 1, D), jnp.float32),
        "ln1w": jnp.ones((L, 1, D), jnp.float32), "ln1b": jnp.zeros((L, 1, D), jnp.float32),
        "ln2w": jnp.ones((L, 1, D), jnp.float32), "ln2b": jnp.zeros((L, 1, D), jnp.float32),
    }


def transformer_encoder_forward(params, x, t, cond, *, num_heads, freq_dim):
    # x: (B, Sx, input_size), t: (B,), cond: (B, Sc, D)  (batch-first)
    _, Sx, _ = x.shape
    D = params["emb_w"].shape[1]

    # Tiny glue left to XLA (per perf review — avoids extra kernel launches):
    # TimestepEmbedder (DiT-style: freq embedding -> Linear -> SiLU -> Linear).
    tf = timestep_frequency_embedding(t, freq_dim)
    temb = jnp.dot(tf, params["t_w1"]) + params["t_b1"]
    temb = temb * jax.nn.sigmoid(temb)
    temb = jnp.dot(temb, params["t_w2"]) + params["t_b2"]          # (B, D)

    cond_full = jnp.concatenate([cond, temb[:, None, :]], axis=1)  # (B, Sc+1, D)
    pe = sine_position_embedding(Sx, D)                            # (Sx, D)

    # TODO(synk): src_key_padding_mask path not implemented (mask=None only).
    return encoder_stack_forward(params, x, cond_full, pe, num_heads=num_heads)


if __name__ == "__main__":
    # Small config consistent with the module's __init__ signature.
    B, Sx, Sc = 2, 8, 1
    input_size, output_size = 12, 12
    latent_dim, num_heads, ff_size, num_layers = 32, 4, 64, 2
    freq_dim = 256  # TimestepEmbedder frequency embedding size (DiT default)

    key = jax.random.PRNGKey(0)
    kp, kx, kt, kc = jax.random.split(key, 4)
    params = init_params(kp, input_size=input_size, output_size=output_size,
                         latent_dim=latent_dim, ff_size=ff_size,
                         num_layers=num_layers, freq_dim=freq_dim)
    x = jax.random.normal(kx, (B, Sx, input_size), dtype=jnp.float32)
    t = jax.random.randint(kt, (B,), 0, 1000).astype(jnp.float32)
    cond = jax.random.normal(kc, (B, Sc, latent_dim), dtype=jnp.float32)

    fwd = jax.jit(functools.partial(transformer_encoder_forward,
                                    num_heads=num_heads, freq_dim=freq_dim))
    out = jax.block_until_ready(fwd(params, x, t, cond))
    assert out.shape == (B, Sx, output_size), out.shape
    assert bool(jnp.all(jnp.isfinite(out)))
    print("KERNEL_OK")
</pallas_src>

<mosaic_0001>
module attributes {stable_mosaic.version = 11 : i64} {
  func.func @_encoder_stack_kernel(%arg0: i32, %arg1: memref<2x8x12xf32, #tpu.memory_space<vmem>>, %arg2: memref<2x2x32xf32, #tpu.memory_space<vmem>>, %arg3: memref<8x32xf32, #tpu.memory_space<vmem>>, %arg4: memref<12x32xf32, #tpu.memory_space<vmem>>, %arg5: memref<1x32xf32, #tpu.memory_space<vmem>>, %arg6: memref<1x32x96xbf16, #tpu.memory_space<vmem>>, %arg7: memref<1x1x96xf32, #tpu.memory_space<vmem>>, %arg8: memref<1x32x32xbf16, #tpu.memory_space<vmem>>, %arg9: memref<1x1x32xf32, #tpu.memory_space<vmem>>, %arg10: memref<1x32x64xbf16, #tpu.memory_space<vmem>>, %arg11: memref<1x1x64xf32, #tpu.memory_space<vmem>>, %arg12: memref<1x64x32xbf16, #tpu.memory_space<vmem>>, %arg13: memref<1x1x32xf32, #tpu.memory_space<vmem>>, %arg14: memref<1x1x32xf32, #tpu.memory_space<vmem>>, %arg15: memref<1x1x32xf32, #tpu.memory_space<vmem>>, %arg16: memref<1x1x32xf32, #tpu.memory_space<vmem>>, %arg17: memref<1x1x32xf32, #tpu.memory_space<vmem>>, %arg18: memref<32x12xf32, #tpu.memory_space<vmem>>, %arg19: memref<1x12xf32, #tpu.memory_space<vmem>>, %arg20: memref<2x8x12xf32, #tpu.memory_space<vmem>>, %arg21: memref<2x10x32xf32, #tpu.memory_space<vmem>>) attributes {dimension_semantics = [#tpu.dimension_semantics<arbitrary>], iteration_bounds = array<i64: 2>, scalar_prefetch = 0 : i64, scratch_operands = 1 : i64, tpu.core_type = #tpu.core_type<tc>, window_params = [{pipeline_mode = #tpu.pipeline_mode<synchronous>, transform_indices = @transform_0, window_bounds = array<i64: 2, 8, 12>}, {pipeline_mode = #tpu.pipeline_mode<synchronous>, transform_indices = @transform_1, window_bounds = array<i64: 2, 2, 32>}, {pipeline_mode = #tpu.pipeline_mode<synchronous>, transform_indices = @transform_2, window_bounds = array<i64: 8, 32>}, {pipeline_mode = #tpu.pipeline_mode<synchronous>, transform_indices = @transform_3, window_bounds = array<i64: 12, 32>}, {pipeline_mode = #tpu.pipeline_mode<synchronous>, transform_indices = @transform_4, window_bounds = array<i64: 1, 32>}, {transform_indices = @transform_5, window_bounds = array<i64: 1, 32, 96>}, {transform_indices = @transform_6, window_bounds = array<i64: 1, 1, 96>}, {transform_indices = @transform_7, window_bounds = array<i64: 1, 32, 32>}, {transform_indices = @transform_8, window_bounds = array<i64: 1, 1, 32>}, {transform_indices = @transform_9, window_bounds = array<i64: 1, 32, 64>}, {transform_indices = @transform_10, window_bounds = array<i64: 1, 1, 64>}, {transform_indices = @transform_11, window_bounds = array<i64: 1, 64, 32>}, {transform_indices = @transform_12, window_bounds = array<i64: 1, 1, 32>}, {transform_indices = @transform_13, window_bounds = array<i64: 1, 1, 32>}, {transform_indices = @transform_14, window_bounds = array<i64: 1, 1, 32>}, {transform_indices = @transform_15, window_bounds = array<i64: 1, 1, 32>}, {transform_indices = @transform_16, window_bounds = array<i64: 1, 1, 32>}, {pipeline_mode = #tpu.pipeline_mode<synchronous>, transform_indices = @transform_17, window_bounds = array<i64: 32, 12>}, {pipeline_mode = #tpu.pipeline_mode<synchronous>, transform_indices = @transform_18, window_bounds = array<i64: 1, 12>}, {pipeline_mode = #tpu.pipeline_mode<synchronous>, transform_indices = @transform_19, window_bounds = array<i64: 2, 8, 12>}]} {
    %c0_i32 = arith.constant 0 : i32
    %0 = arith.cmpi eq, %arg0, %c0_i32 : i32
    %1 = arith.extui %0 : i1 to i32
    %c0_i32_0 = arith.constant 0 : i32
    %2 = arith.cmpi ne, %1, %c0_i32_0 : i32
    scf.if %2 {
      %c0_79 = arith.constant 0 : index
      %c0_80 = arith.constant 0 : index
      %c0_81 = arith.constant 0 : index
      %192 = vector.load %arg1[%c0_79, %c0_80, %c0_81] : memref<2x8x12xf32, #tpu.memory_space<vmem>>, vector<2x8x12xf32>
      %193 = vector.shape_cast %192 : vector<2x8x12xf32> to vector<16x12xf32>
      %194 = arith.truncf %193 : vector<16x12xf32> to vector<16x12xbf16>
      %c0_82 = arith.constant 0 : index
      %c0_83 = arith.constant 0 : index
      %195 = vector.load %arg4[%c0_82, %c0_83] : memref<12x32xf32, #tpu.memory_space<vmem>>, vector<12x32xf32>
      %196 = arith.truncf %195 : vector<12x32xf32> to vector<12x32xbf16>
      %cst_84 = arith.constant dense<0.000000e+00> : vector<16x32xf32>
      %197 = tpu.matmul %194, %196, %cst_84 {dimension_numbers = #tpu.dot_dimension_numbers<[1], [0], [0], [1], [0, 0, 1, 1], [], []>} : vector<16x12xbf16>, vector<12x32xbf16>, vector<16x32xf32> -> vector<16x32xf32>
      %c0_85 = arith.constant 0 : index
      %c0_86 = arith.constant 0 : index
      %198 = vector.load %arg5[%c0_85, %c0_86] : memref<1x32xf32, #tpu.memory_space<vmem>>, vector<1x32xf32>
      %199 = vector.broadcast %198 : vector<1x32xf32> to vector<16x32xf32>
      %200 = arith.addf %197, %199 : vector<16x32xf32>
      %201 = vector.shape_cast %200 : vector<16x32xf32> to vector<2x8x32xf32>
      %c0_87 = arith.constant 0 : index
      %c0_88 = arith.constant 0 : index
      %202 = vector.load %arg3[%c0_87, %c0_88] : memref<8x32xf32, #tpu.memory_space<vmem>>, vector<8x32xf32>
      %203 = vector.shape_cast %202 : vector<8x32xf32> to vector<1x8x32xf32>
      %204 = vector.broadcast %203 : vector<1x8x32xf32> to vector<2x8x32xf32>
      %205 = arith.addf %201, %204 : vector<2x8x32xf32>
      %c0_89 = arith.constant 0 : index
      %c0_90 = arith.constant 0 : index
      %c0_91 = arith.constant 0 : index
      %206 = vector.load %arg2[%c0_89, %c0_90, %c0_91] : memref<2x2x32xf32, #tpu.memory_space<vmem>>, vector<2x2x32xf32>
      %207 = tpu.concatenate %206, %205 in 1 : vector<2x2x32xf32>, vector<2x8x32xf32> -> vector<2x10x32xf32>
      %c0_92 = arith.constant 0 : index
      %c0_93 = arith.constant 0 : index
      %c0_94 = arith.constant 0 : index
      %208 = vector.load %arg21[%c0_92, %c0_93, %c0_94] : memref<2x10x32xf32, #tpu.memory_space<vmem>>, vector<2x10x32xf32>
      tpu.vector_store %arg21[%c0_92, %c0_93, %c0_94], %207 {strides = array<i32>} : memref<2x10x32xf32, #tpu.memory_space<vmem>>, vector<2x10x32xf32>,
    } else {
    }
    %c0 = arith.constant 0 : index
    %c0_1 = arith.constant 0 : index
    %c0_2 = arith.constant 0 : index
    %3 = vector.load %arg21[%c0, %c0_1, %c0_2] : memref<2x10x32xf32, #tpu.memory_space<vmem>>, vector<2x10x32xf32>
    %4 = vector.shape_cast %3 : vector<2x10x32xf32> to vector<20x32xf32>
    %5 = arith.truncf %4 : vector<20x32xf32> to vector<20x32xbf16>
    %c0_3 = arith.constant 0 : index
    %c0_4 = arith.constant 0 : index
    %c0_5 = arith.constant 0 : index
    %6 = vector.load %arg6[%c0_3, %c0_4, %c0_5] : memref<1x32x96xbf16, #tpu.memory_space<vmem>>, vector<1x32x96xbf16>
    %7 = vector.shape_cast %6 : vector<1x32x96xbf16> to vector<32x96xbf16>
    %cst = arith.constant dense<0.000000e+00> : vector<20x96xf32>
    %8 = tpu.matmul %5, %7, %cst {dimension_numbers = #tpu.dot_dimension_numbers<[1], [0], [0], [1], [0, 0, 1, 1], [], []>} : vector<20x32xbf16>, vector<32x96xbf16>, vector<20x96xf32> -> vector<20x96xf32>
    %c0_6 = arith.constant 0 : index
    %c0_7 = arith.constant 0 : index
    %c0_8 = arith.constant 0 : index
    %9 = vector.load %arg7[%c0_6, %c0_7, %c0_8] : memref<1x1x96xf32, #tpu.memory_space<vmem>>, vector<1x1x96xf32>
    %10 = vector.shape_cast %9 : vector<1x1x96xf32> to vector<1x96xf32>
    %11 = vector.broadcast %10 : vector<1x96xf32> to vector<20x96xf32>
    %12 = arith.addf %8, %11 : vector<20x96xf32>
    %13 = vector.extract_strided_slice %12 {offsets = [0, 0], sizes = [20, 32], strides = [1, 1]} : vector<20x96xf32> to vector<20x32xf32>
    %14 = vector.shape_cast %13 : vector<20x32xf32> to vector<2x10x32xf32>
    %15 = vector.extract_strided_slice %12 {offsets = [0, 32], sizes = [20, 32], strides = [1, 1]} : vector<20x96xf32> to vector<20x32xf32>
    %16 = vector.shape_cast %15 : vector<20x32xf32> to vector<2x10x32xf32>
    %17 = vector.extract_strided_slice %12 {offsets = [0, 64], sizes = [20, 32], strides = [1, 1]} : vector<20x96xf32> to vector<20x32xf32>
    %18 = vector.shape_cast %17 : vector<20x32xf32> to vector<2x10x32xf32>
    %19 = vector.extract_strided_slice %14 {offsets = [0, 0, 0], sizes = [2, 10, 8], strides = [1, 1, 1]} : vector<2x10x32xf32> to vector<2x10x8xf32>
    %20 = arith.truncf %19 : vector<2x10x8xf32> to vector<2x10x8xbf16>
    %21 = vector.extract_strided_slice %16 {offsets = [0, 0, 0], sizes = [2, 10, 8], strides = [1, 1, 1]} : vector<2x10x32xf32> to vector<2x10x8xf32>
    %22 = arith.truncf %21 : vector<2x10x8xf32> to vector<2x10x8xbf16>
    "tpu.trace_start"() <{level = 10 : i32, message = "bqd,bkd->bqk"}> : () -> ()
    %cst_9 = arith.constant dense<0.000000e+00> : vector<2x10x10xf32>
    %23 = tpu.matmul %20, %22, %cst_9 {dimension_numbers = #tpu.dot_dimension_numbers<[2], [2], [1], [1], [0, 0, 0, 1, 1, 1], [0], [0]>} : vector<2x10x8xbf16>, vector<2x10x8xbf16>, vector<2x10x10xf32> -> vector<2x10x10xf32>
    "tpu.trace_stop"() : () -> ()
    %cst_10 = arith.constant 0.353553385 : f32
    %24 = vector.broadcast %cst_10 : f32 to vector<2x10x10xf32>
    %25 = arith.mulf %23, %24 : vector<2x10x10xf32>
    %cst_11 = arith.constant dense<0xFF800000> : vector<2x10xf32>
    %26 = vector.multi_reduction <maximumf>, %25, %cst_11 [2] : vector<2x10x10xf32> to vector<2x10xf32>
    %27 = vector.shape_cast %26 : vector<2x10xf32> to vector<2x10x1xf32>
    %28 = vector.broadcast %27 : vector<2x10x1xf32> to vector<2x10x10xf32>
    %29 = arith.subf %25, %28 : vector<2x10x10xf32>
    %30 = math.exp %29 : vector<2x10x10xf32>
    %cst_12 = arith.constant dense<0.000000e+00> : vector<2x10xf32>
    %31 = vector.multi_reduction <add>, %30, %cst_12 [2] : vector<2x10x10xf32> to vector<2x10xf32>
    %32 = vector.shape_cast %31 : vector<2x10xf32> to vector<2x10x1xf32>
    %33 = tpu.reciprocal %32 {approx = true} : vector<2x10x1xf32> -> vector<2x10x1xf32>
    %34 = vector.broadcast %33 : vector<2x10x1xf32> to vector<2x10x10xf32>
    %35 = arith.mulf %30, %34 : vector<2x10x10xf32>
    %36 = arith.truncf %35 : vector<2x10x10xf32> to vector<2x10x10xbf16>
    %37 = vector.extract_strided_slice %18 {offsets = [0, 0, 0], sizes = [2, 10, 8], strides = [1, 1, 1]} : vector<2x10x32xf32> to vector<2x10x8xf32>
    %38 = arith.truncf %37 : vector<2x10x8xf32> to vector<2x10x8xbf16>
    "tpu.trace_start"() <{level = 10 : i32, message = "bqk,bkd->bqd"}> : () -> ()
    %cst_13 = arith.constant dense<0.000000e+00> : vector<2x10x8xf32>
    %39 = tpu.matmul %36, %38, %cst_13 {dimension_numbers = #tpu.dot_dimension_numbers<[2], [1], [1], [2], [0, 0, 0, 1, 1, 2], [0], [0]>} : vector<2x10x10xbf16>, vector<2x10x8xbf16>, vector<2x10x8xf32> -> vector<2x10x8xf32>
    "tpu.trace_stop"() : () -> ()
    %40 = vector.extract_strided_slice %14 {offsets = [0, 0, 8], sizes = [2, 10, 8], strides = [1, 1, 1]} : vector<2x10x32xf32> to vector<2x10x8xf32>
    %41 = arith.truncf %40 : vector<2x10x8xf32> to vector<2x10x8xbf16>
    %42 = vector.extract_strided_slice %16 {offsets = [0, 0, 8], sizes = [2, 10, 8], strides = [1, 1, 1]} : vector<2x10x32xf32> to vector<2x10x8xf32>
    %43 = arith.truncf %42 : vector<2x10x8xf32> to vector<2x10x8xbf16>
    "tpu.trace_start"() <{level = 10 : i32, message = "bqd,bkd->bqk"}> : () -> ()
    %cst_14 = arith.constant dense<0.000000e+00> : vector<2x10x10xf32>
    %44 = tpu.matmul %41, %43, %cst_14 {dimension_numbers = #tpu.dot_dimension_numbers<[2], [2], [1], [1], [0, 0, 0, 1, 1, 1], [0], [0]>} : vector<2x10x8xbf16>, vector<2x10x8xbf16>, vector<2x10x10xf32> -> vector<2x10x10xf32>
    "tpu.trace_stop"() : () -> ()
    %cst_15 = arith.constant 0.353553385 : f32
    %45 = vector.broadcast %cst_15 : f32 to vector<2x10x10xf32>
    %46 = arith.mulf %44, %45 : vector<2x10x10xf32>
    %cst_16 = arith.constant dense<0xFF800000> : vector<2x10xf32>
    %47 = vector.multi_reduction <maximumf>, %46, %cst_16 [2] : vector<2x10x10xf32> to vector<2x10xf32>
    %48 = vector.shape_cast %47 : vector<2x10xf32> to vector<2x10x1xf32>
    %49 = vector.broadcast %48 : vector<2x10x1xf32> to vector<2x10x10xf32>
    %50 = arith.subf %46, %49 : vector<2x10x10xf32>
    %51 = math.exp %50 : vector<2x10x10xf32>
    %cst_17 = arith.constant dense<0.000000e+00> : vector<2x10xf32>
    %52 = vector.multi_reduction <add>, %51, %cst_17 [2] : vector<2x10x10xf32> to vector<2x10xf32>
    %53 = vector.shape_cast %52 : vector<2x10xf32> to vector<2x10x1xf32>
    %54 = tpu.reciprocal %53 {approx = true} : vector<2x10x1xf32> -> vector<2x10x1xf32>
    %55 = vector.broadcast %54 : vector<2x10x1xf32> to vector<2x10x10xf32>
    %56 = arith.mulf %51, %55 : vector<2x10x10xf32>
    %57 = arith.truncf %56 : vector<2x10x10xf32> to vector<2x10x10xbf16>
    %58 = vector.extract_strided_slice %18 {offsets = [0, 0, 8], sizes = [2, 10, 8], strides = [1, 1, 1]} : vector<2x10x32xf32> to vector<2x10x8xf32>
    %59 = arith.truncf %58 : vector<2x10x8xf32> to vector<2x10x8xbf16>
    "tpu.trace_start"() <{level = 10 : i32, message = "bqk,bkd->bqd"}> : () -> ()
    %cst_18 = arith.constant dense<0.000000e+00> : vector<2x10x8xf32>
    %60 = tpu.matmul %57, %59, %cst_18 {dimension_numbers = #tpu.dot_dimension_numbers<[2], [1], [1], [2], [0, 0, 0, 1, 1, 2], [0], [0]>} : vector<2x10x10xbf16>, vector<2x10x8xbf16>, vector<2x10x8xf32> -> vector<2x10x8xf32>
    "tpu.trace_stop"() : () -> ()
    %61 = vector.extract_strided_slice %14 {offsets = [0, 0, 16], sizes = [2, 10, 8], strides = [1, 1, 1]} : vector<2x10x32xf32> to vector<2x10x8xf32>
    %62 = arith.truncf %61 : vector<2x10x8xf32> to vector<2x10x8xbf16>
    %63 = vector.extract_strided_slice %16 {offsets = [0, 0, 16], sizes = [2, 10, 8], strides = [1, 1, 1]} : vector<2x10x32xf32> to vector<2x10x8xf32>
    %64 = arith.truncf %63 : vector<2x10x8xf32> to vector<2x10x8xbf16>
    "tpu.trace_start"() <{level = 10 : i32, message = "bqd,bkd->bqk"}> : () -> ()
    %cst_19 = arith.constant dense<0.000000e+00> : vector<2x10x10xf32>
    %65 = tpu.matmul %62, %64, %cst_19 {dimension_numbers = #tpu.dot_dimension_numbers<[2], [2], [1], [1], [0, 0, 0, 1, 1, 1], [0], [0]>} : vector<2x10x8xbf16>, vector<2x10x8xbf16>, vector<2x10x10xf32> -> vector<2x10x10xf32>
    "tpu.trace_stop"() : () -> ()
    %cst_20 = arith.constant 0.353553385 : f32
    %66 = vector.broadcast %cst_20 : f32 to vector<2x10x10xf32>
    %67 = arith.mulf %65, %66 : vector<2x10x10xf32>
    %cst_21 = arith.constant dense<0xFF800000> : vector<2x10xf32>
    %68 = vector.multi_reduction <maximumf>, %67, %cst_21 [2] : vector<2x10x10xf32> to vector<2x10xf32>
    %69 = vector.shape_cast %68 : vector<2x10xf32> to vector<2x10x1xf32>
    %70 = vector.broadcast %69 : vector<2x10x1xf32> to vector<2x10x10xf32>
    %71 = arith.subf %67, %70 : vector<2x10x10xf32>
    %72 = math.exp %71 : vector<2x10x10xf32>
    %cst_22 = arith.constant dense<0.000000e+00> : vector<2x10xf32>
    %73 = vector.multi_reduction <add>, %72, %cst_22 [2] : vector<2x10x10xf32> to vector<2x10xf32>
    %74 = vector.shape_cast %73 : vector<2x10xf32> to vector<2x10x1xf32>
    %75 = tpu.reciprocal %74 {approx = true} : vector<2x10x1xf32> -> vector<2x10x1xf32>
    %76 = vector.broadcast %75 : vector<2x10x1xf32> to vector<2x10x10xf32>
    %77 = arith.mulf %72, %76 : vector<2x10x10xf32>
    %78 = arith.truncf %77 : vector<2x10x10xf32> to vector<2x10x10xbf16>
    %79 = vector.extract_strided_slice %18 {offsets = [0, 0, 16], sizes = [2, 10, 8], strides = [1, 1, 1]} : vector<2x10x32xf32> to vector<2x10x8xf32>
    %80 = arith.truncf %79 : vector<2x10x8xf32> to vector<2x10x8xbf16>
    "tpu.trace_start"() <{level = 10 : i32, message = "bqk,bkd->bqd"}> : () -> ()
    %cst_23 = arith.constant dense<0.000000e+00> : vector<2x10x8xf32>
    %81 = tpu.matmul %78, %80, %cst_23 {dimension_numbers = #tpu.dot_dimension_numbers<[2], [1], [1], [2], [0, 0, 0, 1, 1, 2], [0], [0]>} : vector<2x10x10xbf16>, vector<2x10x8xbf16>, vector<2x10x8xf32> -> vector<2x10x8xf32>
    "tpu.trace_stop"() : () -> ()
    %82 = vector.extract_strided_slice %14 {offsets = [0, 0, 24], sizes = [2, 10, 8], strides = [1, 1, 1]} : vector<2x10x32xf32> to vector<2x10x8xf32>
    %83 = arith.truncf %82 : vector<2x10x8xf32> to vector<2x10x8xbf16>
    %84 = vector.extract_strided_slice %16 {offsets = [0, 0, 24], sizes = [2, 10, 8], strides = [1, 1, 1]} : vector<2x10x32xf32> to vector<2x10x8xf32>
    %85 = arith.truncf %84 : vector<2x10x8xf32> to vector<2x10x8xbf16>
    "tpu.trace_start"() <{level = 10 : i32, message = "bqd,bkd->bqk"}> : () -> ()
    %cst_24 = arith.constant dense<0.000000e+00> : vector<2x10x10xf32>
    %86 = tpu.matmul %83, %85, %cst_24 {dimension_numbers = #tpu.dot_dimension_numbers<[2], [2], [1], [1], [0, 0, 0, 1, 1, 1], [0], [0]>} : vector<2x10x8xbf16>, vector<2x10x8xbf16>, vector<2x10x10xf32> -> vector<2x10x10xf32>
    "tpu.trace_stop"() : () -> ()
    %cst_25 = arith.constant 0.353553385 : f32
    %87 = vector.broadcast %cst_25 : f32 to vector<2x10x10xf32>
    %88 = arith.mulf %86, %87 : vector<2x10x10xf32>
    %cst_26 = arith.constant dense<0xFF800000> : vector<2x10xf32>
    %89 = vector.multi_reduction <maximumf>, %88, %cst_26 [2] : vector<2x10x10xf32> to vector<2x10xf32>
    %90 = vector.shape_cast %89 : vector<2x10xf32> to vector<2x10x1xf32>
    %91 = vector.broadcast %90 : vector<2x10x1xf32> to vector<2x10x10xf32>
    %92 = arith.subf %88, %91 : vector<2x10x10xf32>
    %93 = math.exp %92 : vector<2x10x10xf32>
    %cst_27 = arith.constant dense<0.000000e+00> : vector<2x10xf32>
    %94 = vector.multi_reduction <add>, %93, %cst_27 [2] : vector<2x10x10xf32> to vector<2x10xf32>
    %95 = vector.shape_cast %94 : vector<2x10xf32> to vector<2x10x1xf32>
    %96 = tpu.reciprocal %95 {approx = true} : vector<2x10x1xf32> -> vector<2x10x1xf32>
    %97 = vector.broadcast %96 : vector<2x10x1xf32> to vector<2x10x10xf32>
    %98 = arith.mulf %93, %97 : vector<2x10x10xf32>
    %99 = arith.truncf %98 : vector<2x10x10xf32> to vector<2x10x10xbf16>
    %100 = vector.extract_strided_slice %18 {offsets = [0, 0, 24], sizes = [2, 10, 8], strides = [1, 1, 1]} : vector<2x10x32xf32> to vector<2x10x8xf32>
    %101 = arith.truncf %100 : vector<2x10x8xf32> to vector<2x10x8xbf16>
    "tpu.trace_start"() <{level = 10 : i32, message = "bqk,bkd->bqd"}> : () -> ()
    %cst_28 = arith.constant dense<0.000000e+00> : vector<2x10x8xf32>
    %102 = tpu.matmul %99, %101, %cst_28 {dimension_numbers = #tpu.dot_dimension_numbers<[2], [1], [1], [2], [0, 0, 0, 1, 1, 2], [0], [0]>} : vector<2x10x10xbf16>, vector<2x10x8xbf16>, vector<2x10x8xf32> -> vector<2x10x8xf32>
    "tpu.trace_stop"() : () -> ()
    %103 = tpu.concatenate %39, %60, %81, %102 in 2 : vector<2x10x8xf32>, vector<2x10x8xf32>, vector<2x10x8xf32>, vector<2x10x8xf32> -> vector<2x10x32xf32>
    %104 = vector.shape_cast %103 : vector<2x10x32xf32> to vector<20x32xf32>
    %105 = arith.truncf %104 : vector<20x32xf32> to vector<20x32xbf16>
    %c0_29 = arith.constant 0 : index
    %c0_30 = arith.constant 0 : index
    %c0_31 = arith.constant 0 : index
    %106 = vector.load %arg8[%c0_29, %c0_30, %c0_31] : memref<1x32x32xbf16, #tpu.memory_space<vmem>>, vector<1x32x32xbf16>
    %107 = vector.shape_cast %106 : vector<1x32x32xbf16> to vector<32x32xbf16>
    %cst_32 = arith.constant dense<0.000000e+00> : vector<20x32xf32>
    %108 = tpu.matmul %105, %107, %cst_32 {dimension_numbers = #tpu.dot_dimension_numbers<[1], [0], [0], [1], [0, 0, 1, 1], [], []>} : vector<20x32xbf16>, vector<32x32xbf16>, vector<20x32xf32> -> vector<20x32xf32>
    %c0_33 = arith.constant 0 : index
    %c0_34 = arith.constant 0 : index
    %c0_35 = arith.constant 0 : index
    %109 = vector.load %arg9[%c0_33, %c0_34, %c0_35] : memref<1x1x32xf32, #tpu.memory_space<vmem>>, vector<1x1x32xf32>
    %110 = vector.shape_cast %109 : vector<1x1x32xf32> to vector<1x32xf32>
    %111 = vector.broadcast %110 : vector<1x32xf32> to vector<20x32xf32>
    %112 = arith.addf %108, %111 : vector<20x32xf32>
    %113 = arith.addf %4, %112 : vector<20x32xf32>
    %c0_36 = arith.constant 0 : index
    %c0_37 = arith.constant 0 : index
    %c0_38 = arith.constant 0 : index
    %114 = vector.load %arg14[%c0_36, %c0_37, %c0_38] : memref<1x1x32xf32, #tpu.memory_space<vmem>>, vector<1x1x32xf32>
    %115 = vector.shape_cast %114 : vector<1x1x32xf32> to vector<1x32xf32>
    %c0_39 = arith.constant 0 : index
    %c0_40 = arith.constant 0 : index
    %c0_41 = arith.constant 0 : index
    %116 = vector.load %arg15[%c0_39, %c0_40, %c0_41] : memref<1x1x32xf32, #tpu.memory_space<vmem>>, vector<1x1x32xf32>
    %117 = vector.shape_cast %116 : vector<1x1x32xf32> to vector<1x32xf32>
    %cst_42 = arith.constant dense<0.000000e+00> : vector<20xf32>
    %118 = vector.multi_reduction <add>, %113, %cst_42 [1] : vector<20x32xf32> to vector<20xf32>
    %119 = vector.shape_cast %118 : vector<20xf32> to vector<20x1xf32>
    %cst_43 = arith.constant 3.200000e+01 : f32
    %120 = vector.broadcast %cst_43 : f32 to vector<20x1xf32>
    %121 = arith.divf %119, %120 : vector<20x1xf32>
    %122 = vector.broadcast %121 : vector<20x1xf32> to vector<20x32xf32>
    %123 = arith.subf %113, %122 : vector<20x32xf32>
    %124 = arith.mulf %123, %123 : vector<20x32xf32>
    %cst_44 = arith.constant dense<0.000000e+00> : vector<20xf32>
    %125 = vector.multi_reduction <add>, %124, %cst_44 [1] : vector<20x32xf32> to vector<20xf32>
    %126 = vector.shape_cast %125 : vector<20xf32> to vector<20x1xf32>
    %cst_45 = arith.constant 3.200000e+01 : f32
    %127 = vector.broadcast %cst_45 : f32 to vector<20x1xf32>
    %128 = arith.divf %126, %127 : vector<20x1xf32>
    %cst_46 = arith.constant 9.99999974E-6 : f32
    %129 = vector.broadcast %cst_46 : f32 to vector<20x1xf32>
    %130 = arith.addf %128, %129 : vector<20x1xf32>
    %131 = math.rsqrt %130 : vector<20x1xf32>
    %132 = vector.broadcast %131 : vector<20x1xf32> to vector<20x32xf32>
    %133 = arith.mulf %123, %132 : vector<20x32xf32>
    %134 = vector.broadcast %115 : vector<1x32xf32> to vector<20x32xf32>
    %135 = arith.mulf %133, %134 : vector<20x32xf32>
    %136 = vector.broadcast %117 : vector<1x32xf32> to vector<20x32xf32>
    %137 = arith.addf %135, %136 : vector<20x32xf32>
    %138 = arith.truncf %137 : vector<20x32xf32> to vector<20x32xbf16>
    %c0_47 = arith.constant 0 : index
    %c0_48 = arith.constant 0 : index
    %c0_49 = arith.constant 0 : index
    %139 = vector.load %arg10[%c0_47, %c0_48, %c0_49] : memref<1x32x64xbf16, #tpu.memory_space<vmem>>, vector<1x32x64xbf16>
    %140 = vector.shape_cast %139 : vector<1x32x64xbf16> to vector<32x64xbf16>
    %cst_50 = arith.constant dense<0.000000e+00> : vector<20x64xf32>
    %141 = tpu.matmul %138, %140, %cst_50 {dimension_numbers = #tpu.dot_dimension_numbers<[1], [0], [0], [1], [0, 0, 1, 1], [], []>} : vector<20x32xbf16>, vector<32x64xbf16>, vector<20x64xf32> -> vector<20x64xf32>
    %c0_51 = arith.constant 0 : index
    %c0_52 = arith.constant 0 : index
    %c0_53 = arith.constant 0 : index
    %142 = vector.load %arg11[%c0_51, %c0_52, %c0_53] : memref<1x1x64xf32, #tpu.memory_space<vmem>>, vector<1x1x64xf32>
    %143 = vector.shape_cast %142 : vector<1x1x64xf32> to vector<1x64xf32>
    %144 = vector.broadcast %143 : vector<1x64xf32> to vector<20x64xf32>
    %145 = arith.addf %141, %144 : vector<20x64xf32>
    %cst_54 = arith.constant 5.000000e-01 : f32
    %146 = vector.broadcast %cst_54 : f32 to vector<20x64xf32>
    %147 = arith.mulf %146, %145 : vector<20x64xf32>
    %cst_55 = arith.constant 0.707106769 : f32
    %148 = vector.broadcast %cst_55 : f32 to vector<20x64xf32>
    %149 = arith.mulf %145, %148 : vector<20x64xf32>
    %150 = math.erf %149 : vector<20x64xf32>
    %cst_56 = arith.constant 1.000000e+00 : f32
    %151 = vector.broadcast %cst_56 : f32 to vector<20x64xf32>
    %152 = arith.addf %151, %150 : vector<20x64xf32>
    %153 = arith.mulf %147, %152 : vector<20x64xf32>
    %154 = arith.truncf %153 : vector<20x64xf32> to vector<20x64xbf16>
    %c0_57 = arith.constant 0 : index
    %c0_58 = arith.constant 0 : index
    %c0_59 = arith.constant 0 : index
    %155 = vector.load %arg12[%c0_57, %c0_58, %c0_59] : memref<1x64x32xbf16, #tpu.memory_space<vmem>>, vector<1x64x32xbf16>
    %156 = vector.shape_cast %155 : vector<1x64x32xbf16> to vector<64x32xbf16>
    %cst_60 = arith.constant dense<0.000000e+00> : vector<20x32xf32>
    %157 = tpu.matmul %154, %156, %cst_60 {dimension_numbers = #tpu.dot_dimension_numbers<[1], [0], [0], [1], [0, 0, 1, 1], [], []>} : vector<20x64xbf16>, vector<64x32xbf16>, vector<20x32xf32> -> vector<20x32xf32>
    %c0_61 = arith.constant 0 : index
    %c0_62 = arith.constant 0 : index
    %c0_63 = arith.constant 0 : index
    %158 = vector.load %arg13[%c0_61, %c0_62, %c0_63] : memref<1x1x32xf32, #tpu.memory_space<vmem>>, vector<1x1x32xf32>
    %159 = vector.shape_cast %158 : vector<1x1x32xf32> to vector<1x32xf32>
    %160 = vector.broadcast %159 : vector<1x32xf32> to vector<20x32xf32>
    %161 = arith.addf %157, %160 : vector<20x32xf32>
    %162 = arith.addf %137, %161 : vector<20x32xf32>
    %c0_64 = arith.constant 0 : index
    %c0_65 = arith.constant 0 : index
    %c0_66 = arith.constant 0 : index
    %163 = vector.load %arg16[%c0_64, %c0_65, %c0_66] : memref<1x1x32xf32, #tpu.memory_space<vmem>>, vector<1x1x32xf32>
    %164 = vector.shape_cast %163 : vector<1x1x32xf32> to vector<1x32xf32>
    %c0_67 = arith.constant 0 : index
    %c0_68 = arith.constant 0 : index
    %c0_69 = arith.constant 0 : index
    %165 = vector.load %arg17[%c0_67, %c0_68, %c0_69] : memref<1x1x32xf32, #tpu.memory_space<vmem>>, vector<1x1x32xf32>
    %166 = vector.shape_cast %165 : vector<1x1x32xf32> to vector<1x32xf32>
    %cst_70 = arith.constant dense<0.000000e+00> : vector<20xf32>
    %167 = vector.multi_reduction <add>, %162, %cst_70 [1] : vector<20x32xf32> to vector<20xf32>
    %168 = vector.shape_cast %167 : vector<20xf32> to vector<20x1xf32>
    %cst_71 = arith.constant 3.200000e+01 : f32
    %169 = vector.broadcast %cst_71 : f32 to vector<20x1xf32>
    %170 = arith.divf %168, %169 : vector<20x1xf32>
    %171 = vector.broadcast %170 : vector<20x1xf32> to vector<20x32xf32>
    %172 = arith.subf %162, %171 : vector<20x32xf32>
    %173 = arith.mulf %172, %172 : vector<20x32xf32>
    %cst_72 = arith.constant dense<0.000000e+00> : vector<20xf32>
    %174 = vector.multi_reduction <add>, %173, %cst_72 [1] : vector<20x32xf32> to vector<20xf32>
    %175 = vector.shape_cast %174 : vector<20xf32> to vector<20x1xf32>
    %cst_73 = arith.constant 3.200000e+01 : f32
    %176 = vector.broadcast %cst_73 : f32 to vector<20x1xf32>
    %177 = arith.divf %175, %176 : vector<20x1xf32>
    %cst_74 = arith.constant 9.99999974E-6 : f32
    %178 = vector.broadcast %cst_74 : f32 to vector<20x1xf32>
    %179 = arith.addf %177, %178 : vector<20x1xf32>
    %180 = math.rsqrt %179 : vector<20x1xf32>
    %181 = vector.broadcast %180 : vector<20x1xf32> to vector<20x32xf32>
    %182 = arith.mulf %172, %181 : vector<20x32xf32>
    %183 = vector.broadcast %164 : vector<1x32xf32> to vector<20x32xf32>
    %184 = arith.mulf %182, %183 : vector<20x32xf32>
    %185 = vector.broadcast %166 : vector<1x32xf32> to vector<20x32xf32>
    %186 = arith.addf %184, %185 : vector<20x32xf32>
    %187 = vector.shape_cast %186 : vector<20x32xf32> to vector<2x10x32xf32>
    %c0_75 = arith.constant 0 : index
    %c0_76 = arith.constant 0 : index
    %c0_77 = arith.constant 0 : index
    %188 = vector.load %arg21[%c0_75, %c0_76, %c0_77] : memref<2x10x32xf32, #tpu.memory_space<vmem>>, vector<2x10x32xf32>
    tpu.vector_store %arg21[%c0_75, %c0_76, %c0_77], %187 {strides = array<i32>} : memref<2x10x32xf32, #tpu.memory_space<vmem>>, vector<2x10x32xf32>,
    %c1_i32 = arith.constant 1 : i32
    %189 = arith.cmpi eq, %arg0, %c1_i32 : i32
    %190 = arith.extui %189 : i1 to i32
    %c0_i32_78 = arith.constant 0 : i32
    %191 = arith.cmpi ne, %190, %c0_i32_78 : i32
    scf.if %191 {
      %192 = vector.shape_cast %186 : vector<20x32xf32> to vector<2x10x32xf32>
      %193 = vector.extract_strided_slice %192 {offsets = [0, 2, 0], sizes = [2, 8, 32], strides = [1, 1, 1]} : vector<2x10x32xf32> to vector<2x8x32xf32>
      %194 = vector.shape_cast %193 : vector<2x8x32xf32> to vector<16x32xf32>
      %195 = arith.truncf %194 : vector<16x32xf32> to vector<16x32xbf16>
      %c0_79 = arith.constant 0 : index
      %c0_80 = arith.constant 0 : index
      %196 = vector.load %arg18[%c0_79, %c0_80] : memref<32x12xf32, #tpu.memory_space<vmem>>, vector<32x12xf32>
      %197 = arith.truncf %196 : vector<32x12xf32> to vector<32x12xbf16>
      %cst_81 = arith.constant dense<0.000000e+00> : vector<16x12xf32>
      %198 = tpu.matmul %195, %197, %cst_81 {dimension_numbers = #tpu.dot_dimension_numbers<[1], [0], [0], [1], [0, 0, 1, 1], [], []>} : vector<16x32xbf16>, vector<32x12xbf16>, vector<16x12xf32> -> vector<16x12xf32>
      %c0_82 = arith.constant 0 : index
      %c0_83 = arith.constant 0 : index
      %199 = vector.load %arg19[%c0_82, %c0_83] : memref<1x12xf32, #tpu.memory_space<vmem>>, vector<1x12xf32>
      %200 = vector.broadcast %199 : vector<1x12xf32> to vector<16x12xf32>
      %201 = arith.addf %198, %200 : vector<16x12xf32>
      %202 = vector.shape_cast %201 : vector<16x12xf32> to vector<2x8x12xf32>
      %c0_84 = arith.constant 0 : index
      %c0_85 = arith.constant 0 : index
      %c0_86 = arith.constant 0 : index
      %203 = vector.load %arg20[%c0_84, %c0_85, %c0_86] : memref<2x8x12xf32, #tpu.memory_space<vmem>>, vector<2x8x12xf32>
      tpu.vector_store %arg20[%c0_84, %c0_85, %c0_86], %202 {strides = array<i32>} : memref<2x8x12xf32, #tpu.memory_space<vmem>>, vector<2x8x12xf32>,
    } else {
    }
    return
  }
  func.func @transform_0(%arg0: i32) -> (i32, i32, i32) {
    %c0_i32 = arith.constant 0 : i32
    %c0_i32_0 = arith.constant 0 : i32
    %c0_i32_1 = arith.constant 0 : i32
    %c0_i32_2 = arith.constant 0 : i32
    return %c0_i32, %c0_i32_0, %c0_i32_1 : i32, i32, i32
  }
  func.func @transform_1(%arg0: i32) -> (i32, i32, i32) {
    %c0_i32 = arith.constant 0 : i32
    %c0_i32_0 = arith.constant 0 : i32
    %c0_i32_1 = arith.constant 0 : i32
    %c0_i32_2 = arith.constant 0 : i32
    return %c0_i32, %c0_i32_0, %c0_i32_1 : i32, i32, i32
  }
  func.func @transform_2(%arg0: i32) -> (i32, i32) {
    %c0_i32 = arith.constant 0 : i32
    %c0_i32_0 = arith.constant 0 : i32
    %c0_i32_1 = arith.constant 0 : i32
    return %c0_i32, %c0_i32_0 : i32, i32
  }
  func.func @transform_3(%arg0: i32) -> (i32, i32) {
    %c0_i32 = arith.constant 0 : i32
    %c0_i32_0 = arith.constant 0 : i32
    %c0_i32_1 = arith.constant 0 : i32
    return %c0_i32, %c0_i32_0 : i32, i32
  }
  func.func @transform_4(%arg0: i32) -> (i32, i32) {
    %c0_i32 = arith.constant 0 : i32
    %c0_i32_0 = arith.constant 0 : i32
    %c0_i32_1 = arith.constant 0 : i32
    return %c0_i32, %c0_i32_0 : i32, i32
  }
  func.func @transform_5(%arg0: i32) -> (i32, i32, i32) {
    %c0_i32 = arith.constant 0 : i32
    %c0_i32_0 = arith.constant 0 : i32
    %c0_i32_1 = arith.constant 0 : i32
    return %arg0, %c0_i32, %c0_i32_0 : i32, i32, i32
  }
  func.func @transform_6(%arg0: i32) -> (i32, i32, i32) {
    %c0_i32 = arith.constant 0 : i32
    %c0_i32_0 = arith.constant 0 : i32
    %c0_i32_1 = arith.constant 0 : i32
    return %arg0, %c0_i32, %c0_i32_0 : i32, i32, i32
  }
  func.func @transform_7(%arg0: i32) -> (i32, i32, i32) {
    %c0_i32 = arith.constant 0 : i32
    %c0_i32_0 = arith.constant 0 : i32
    %c0_i32_1 = arith.constant 0 : i32
    return %arg0, %c0_i32, %c0_i32_0 : i32, i32, i32
  }
  func.func @transform_8(%arg0: i32) -> (i32, i32, i32) {
    %c0_i32 = arith.constant 0 : i32
    %c0_i32_0 = arith.constant 0 : i32
    %c0_i32_1 = arith.constant 0 : i32
    return %arg0, %c0_i32, %c0_i32_0 : i32, i32, i32
  }
  func.func @transform_9(%arg0: i32) -> (i32, i32, i32) {
    %c0_i32 = arith.constant 0 : i32
    %c0_i32_0 = arith.constant 0 : i32
    %c0_i32_1 = arith.constant 0 : i32
    return %arg0, %c0_i32, %c0_i32_0 : i32, i32, i32
  }
  func.func @transform_10(%arg0: i32) -> (i32, i32, i32) {
    %c0_i32 = arith.constant 0 : i32
    %c0_i32_0 = arith.constant 0 : i32
    %c0_i32_1 = arith.constant 0 : i32
    return %arg0, %c0_i32, %c0_i32_0 : i32, i32, i32
  }
  func.func @transform_11(%arg0: i32) -> (i32, i32, i32) {
    %c0_i32 = arith.constant 0 : i32
    %c0_i32_0 = arith.constant 0 : i32
    %c0_i32_1 = arith.constant 0 : i32
    return %arg0, %c0_i32, %c0_i32_0 : i32, i32, i32
  }
  func.func @transform_12(%arg0: i32) -> (i32, i32, i32) {
    %c0_i32 = arith.constant 0 : i32
    %c0_i32_0 = arith.constant 0 : i32
    %c0_i32_1 = arith.constant 0 : i32
    return %arg0, %c0_i32, %c0_i32_0 : i32, i32, i32
  }
  func.func @transform_13(%arg0: i32) -> (i32, i32, i32) {
    %c0_i32 = arith.constant 0 : i32
    %c0_i32_0 = arith.constant 0 : i32
    %c0_i32_1 = arith.constant 0 : i32
    return %arg0, %c0_i32, %c0_i32_0 : i32, i32, i32
  }
  func.func @transform_14(%arg0: i32) -> (i32, i32, i32) {
    %c0_i32 = arith.constant 0 : i32
    %c0_i32_0 = arith.constant 0 : i32
    %c0_i32_1 = arith.constant 0 : i32
    return %arg0, %c0_i32, %c0_i32_0 : i32, i32, i32
  }
  func.func @transform_15(%arg0: i32) -> (i32, i32, i32) {
    %c0_i32 = arith.constant 0 : i32
    %c0_i32_0 = arith.constant 0 : i32
    %c0_i32_1 = arith.constant 0 : i32
    return %arg0, %c0_i32, %c0_i32_0 : i32, i32, i32
  }
  func.func @transform_16(%arg0: i32) -> (i32, i32, i32) {
    %c0_i32 = arith.constant 0 : i32
    %c0_i32_0 = arith.constant 0 : i32
    %c0_i32_1 = arith.constant 0 : i32
    return %arg0, %c0_i32, %c0_i32_0 : i32, i32, i32
  }
  func.func @transform_17(%arg0: i32) -> (i32, i32) {
    %c0_i32 = arith.constant 0 : i32
    %c0_i32_0 = arith.constant 0 : i32
    %c0_i32_1 = arith.constant 0 : i32
    return %c0_i32, %c0_i32_0 : i32, i32
  }
  func.func @transform_18(%arg0: i32) -> (i32, i32) {
    %c0_i32 = arith.constant 0 : i32
    %c0_i32_0 = arith.constant 0 : i32
    %c0_i32_1 = arith.constant 0 : i32
    return %c0_i32, %c0_i32_0 : i32, i32
  }
  func.func @transform_19(%arg0: i32) -> (i32, i32, i32) {
    %c0_i32 = arith.constant 0 : i32
    %c0_i32_0 = arith.constant 0 : i32
    %c0_i32_1 = arith.constant 0 : i32
    %c0_i32_2 = arith.constant 0 : i32
    return %c0_i32, %c0_i32_0, %c0_i32_1 : i32, i32, i32
  }
}

</mosaic_0001>

<bundles_post_ra>
// kernel: transformer_encoder_forward.1
= control target key start
LH: loop header
LB: loop body
LE: loop exit
PB: predicated region body
PF: predicated region fallthrough
CT: control target
= control target key end

     0   :  { %s5205_s0 = inlined_call_operand.vmem [shape: f32[2,8,12], index: 0, kind: input, shape index: {}]   ;;  %s5206_s1 = inlined_call_operand.vmem [shape: f32[2,2,32], index: 1, kind: input, shape index: {}]   ;;  %s5207_s2 = inlined_call_operand.vmem [shape: f32[8,32], index: 2, kind: input, shape index: {}]   ;;  %s5208_s3 = inlined_call_operand.vmem [shape: f32[12,32], index: 3, kind: input, shape index: {}]   ;;  %s5209_s4 = inlined_call_operand.vmem [shape: f32[1,32], index: 4, kind: input, shape index: {}]   ;;  %s5210_s5 = inlined_call_operand.vmem [shape: bf16[2,32,96], index: 5, kind: input, shape index: {}]   ;;  %s5211_s6 = inlined_call_operand.vmem [shape: f32[2,1,96], index: 6, kind: input, shape index: {}]   ;;  %s5212_s7 = inlined_call_operand.vmem [shape: bf16[2,32,32], index: 7, kind: input, shape index: {}]   ;;  %s5213_s8 = inlined_call_operand.vmem [shape: f32[2,1,32], index: 8, kind: input, shape index: {}]   ;;  %s5214_s9 = inlined_call_operand.vmem [shape: bf16[2,32,64], index: 9, kind: input, shape index: {}]   ;;  %s5215_s10 = inlined_call_operand.vmem [shape: f32[2,1,64], index: 10, kind: input, shape index: {}]   ;;  %s5216_s11 = inlined_call_operand.vmem [shape: bf16[2,64,32], index: 11, kind: input, shape index: {}]   ;;  %s5217_s12 = inlined_call_operand.vmem [shape: f32[2,1,32], index: 12, kind: input, shape index: {}]   ;;  %s5218_s13 = inlined_call_operand.vmem [shape: f32[2,1,32], index: 13, kind: input, shape index: {}]   ;;  %s5219_s14 = inlined_call_operand.vmem [shape: f32[2,1,32], index: 14, kind: input, shape index: {}]   ;;  %s5220_s15 = inlined_call_operand.vmem [shape: f32[2,1,32], index: 15, kind: input, shape index: {}]   ;;  %s5221_s16 = inlined_call_operand.vmem [shape: f32[2,1,32], index: 16, kind: input, shape index: {}]   ;;  %s5222_s17 = inlined_call_operand.vmem [shape: f32[32,12], index: 17, kind: input, shape index: {}]   ;;  %s5223_s18 = inlined_call_operand.vmem [shape: f32[1,12], index: 18, kind: input, shape index: {}]   ;;  %s5224_s19 = inlined_call_operand.hbm [shape: f32[2,8,12], index: 19, kind: output, shape index: {}]  }
   0x1   :  { %5231 = sst [smem:[#allocation7_spill]] %s5205_s0 }
   0x2   :  { %5232 = sst [smem:[#allocation8_spill]] %s5206_s1 }
   0x3   :  { %5233 = sst [smem:[#allocation9_spill]] %s5207_s2 }
   0x4   :  { %5234 = sst [smem:[#allocation10_spill]] %s5208_s3 }
   0x5   :  { %5235 = sst [smem:[#allocation11_spill]] %s5210_s5 }
   0x6   :  { %5236 = sst [smem:[#allocation12_spill]] %s5212_s7 }
   0x7   :  { %5237 = sst [smem:[#allocation13_spill]] %s5214_s9 }
   0x8   :  { %5238 = sst [smem:[#allocation14_spill]] %s5215_s10 }
   0x9   :  { %5239 = sst [smem:[#allocation15_spill]] %s5222_s17 }
   0xa   :  { %5240 = sst [smem:[#allocation16_spill]] %s5223_s18 }
   0xb   :  { %5241 = sst [smem:[#allocation17_spill]] %s5224_s19 }
   0xc   :  { %24 = vsyncpa [#allocation4], 0  ;;  %s4472_s0 = smov 0  }
   0xd LB: > { %5242 = sst [smem:[#allocation6_spill]] %s4343_s0  ;;  %s4478_s30 = sadd.s32 4294967295, %s4343_s0   ;;  %s4343_s0 = sphi %s4472_s0, %s30_s0  }
   0xe   : > { %p3902_p0 = scmp.ge.s32.totalorder %s4343_s0, 1  ;;  %p627_p1 = scmp.lt.s32.totalorder %s4343_s0, 3 }
  0x10   : > { %p628_p2 = pnand %p3902_p0, %p627_p1 }
  0x11   : > { %p717_p3 = scmp.lt.s32.totalorder (!%p628_p2), %s4478_s30, 1  ;;  %s5243_s5 = sld [smem:[#allocation11_spill]] (!%p628_p2) }
  0x12   : > { %631 = sbr.rel (%p628_p2) target bundleno = 4770 (0x12a2), region = 96  ;;  %s5244_s7 = sld [smem:[#allocation12_spill]] (!%p628_p2) }
  0x13   : > { %s5245_s9 = sld [smem:[#allocation13_spill]] (!%p628_p2)  ;;  %p3911_p4 = scmp.ne.s32.totalorder (!%p628_p2), %s4478_s30, 0 }
  0x19   : > { %s4484_s20 = scalar_select %p717_p3, %s4478_s30, 1 }
  0x1a   : > { %765 = sbr.rel (%p3911_p4) target bundleno = 263 (0x107), region = 100  ;;  %s5247_s26 = sld [smem:[#allocation10_spill]] (!%p3911_p4)  ;;  %vm783_vm0 = vcmask (!%p3911_p4), 1045504   ;;  %v4345_v2 = vmov (!%p3911_p4), 0.0   ;;  %vm4346_vm1 = vmmov (!%p3911_p4), 0   ;;  %vm779_vm2 = vcmask (!%p3911_p4), 97280  }
  0x1b   : > { %s3965_s21 = sshll.u32 %s4484_s20, 4  ;;  %s3968_s24 = sshll.u32 %s4484_s20, 5  ;;  %4024 = vmatprep.subr.bf16.mxu0 (!%p3911_p4), %v4345_v2  ;;  %4026 = vmatprep.mubr.msk.bf16.mxu0 (!%p3911_p4), %vm4346_vm1, %v4345_v2  ;;  %v3912_v8 = vld [vmem:[%s5209_s4] ss:$0 sm:$0xff] (!%p3911_p4)  ;;  %vm839_vm3 = vcmask (!%p3911_p4), 1041408   ;;  %vm844_vm4 = vcmask (!%p3911_p4), 254976  }
  0x1c   : > { %s4494_s25 = scalar_lea.vmem %s5243_s5, %s3965_s21  ;;  %s4499_s27 = scalar_lea.vmem %s5244_s7, %s3965_s21  ;;  %vm842_vm5 = vcmask (!%p3911_p4), 261120  }
  0x1d   : > { %s4508_s17 = scalar_lea.vmem %s5245_s9, %s3965_s21  ;;  %s4518_s3 = scalar_lea.vmem %s5216_s11, %s3968_s24 }
  0x1e   : > { %s748_s28 = scalar_lea.vmem %s5217_s12, %s4484_s20  ;;  %s751_s18 = scalar_lea.vmem %s5218_s13, %s4484_s20 }
  0x1f   : > { %s754_s9 = scalar_lea.vmem %s5219_s14, %s4484_s20  ;;  %s757_s23 = scalar_lea.vmem %s5220_s15, %s4484_s20 }
  0x20   : > { %s760_s2 = scalar_lea.vmem %s5221_s16, %s4484_s20  ;;  %v769_v0 = vld [vmem:[%s5247_s26] sm:$0xff] (!%p3911_p4)  ;;  %v770_v1 = vld [vmem:[%s5247_s26 + $0x8] sm:$0xf] (!%p3911_p4)  ;;  %s5248_s21 = sld [smem:[#allocation7_spill]] (!%p3911_p4) }
  0x21   : > { %v771_v3 = vpack.c.bf16 %v770_v1, %v769_v0  ;;  %s5249_s29 = sld [smem:[#allocation9_spill]]  ;;  %s5250_s1 = sld [smem:[#allocation8_spill]] }
  0x23   : > { %v785_v6 = vsel %vm783_vm0, %v771_v3, 0 }
  0x24   : > { %4025 = vmatpush3.bf16.msra.mxu0 %v785_v6 }
  0x26   : > { %v766_v4 = vld [vmem:[%s5248_s21] sm:$0xff]  ;;  %v767_v5 = vld [vmem:[%s5248_s21 + $0x8] sm:$0xff] }
  0x27   : > { %v768_v7 = vpack.c.bf16 %v767_v5, %v766_v4  ;;  %v828_v10 = vld [vmem:[%s5249_s29] sm:$0xff] }
  0x28   : > { %v831_v17 = vld [vmem:[%s5250_s1] sm:$0x3]  ;;  %v832_v20 = vld [vmem:[%s5250_s1 + $0x2] sm:$0x3] }
  0x29   : > { %4027 = vmatmul.mubr.msk.bf16.vlgmr.msra.gmra.mrb[0].mxu0 %vm779_vm2, %v768_v7 }
  0xfc   : > { %v821_v9 = vpop.f32.mrb[0].mxu0 }
  0xfd   : > { %v822_v11 = vadd.f32 %v3912_v8, %v821_v9  ;;  %v4028_v12 = vpop.f32.mrb[1].mxu0 }
  0xfe   : > { %v824_v13 = vpop.f32.mrb[2].mxu0 }
  0xff   : > { %v829_v14 = vadd.f32 %v828_v10, %v822_v11  ;;  %v825_v15 = vadd.f32 %v3912_v8, %v824_v13  ;;  %v4029_v16 = vpop.f32.mrb[3].mxu0 }
 0x101   : > { %v835_v18 = vrot.slane %v829_v14, 6  ;;  %v830_v19 = vadd.f32 %v828_v10, %v825_v15 }
 0x103   : > { %v840_v21 = vsel %vm839_vm3, %v831_v17, %v835_v18  ;;  %845 = vst.msk [vmem:[#allocation2 + $0x8] sm:$0x3] %vm844_vm4, %v835_v18  ;;  %v836_v22 = vrot.slane %v830_v19, 6 }
 0x104   : > { %843 = vst.msk [vmem:[#allocation2] sm:$0xff] %vm842_vm5, %v840_v21 }
 0x105   : > { %v841_v23 = vsel %vm839_vm3, %v832_v20, %v836_v22  ;;  %847 = vst.msk [vmem:[#allocation2 + $0x18] sm:$0x3] %vm844_vm4, %v836_v22 }
 0x106   : > { %846 = vst.msk [vmem:[#allocation2 + $0x10] sm:$0xff] %vm842_vm5, %v841_v23 }
 0x107 PF: > { %v4211_v24 = vld [vmem:[%s4494_s25] sm:$0xff]   ;;  %v860_v25 = vlaneseq  ;;  %v4212_v26 = vld [vmem:[%s4494_s25 + $0x8] sm:$0xff]   ;;  %v4347_v29 = vmov 1983009808   ;;  %vm984_vm6 = vcmask 261120   ;;  %s5251_s24 = scalar_lea.vmem %s5211_s6, %s4484_s20  ;;  %v4348_v6 = vmov 0.0  }
 0x108   : > { %4030 = vmatprep.subr.bf16.mxu0 %v4211_v24  ;;  %v858_v30 = vunpack.c.l.s4 %v4347_v29  ;;  %v3916_v60 = vld [vmem:[%s5251_s24] ss:$0 sm:$0xff]  ;;  %4038 = vmatprep.subr.bf16.mxu1 %v4348_v6  ;;  %vm4349_vm7 = vmmov 0   ;;  %s4350_s0 = smov 96   ;;  %vm1141_vm8 = vcmask 64512   ;;  %vm1243_vm9 = vcmask 80896  }
 0x109   : > { %4031 = vmatpush3.bf16.msra.mxu0 %v4211_v24  ;;  %v4567_v31 = vshrl.u32 %v860_v25, 7  ;;  %4040 = vmatprep.mubr.msk.bf16.mxu1 %vm4349_vm7, %v4348_v6  ;;  %vm1247_vm10 = vcmask 74752   ;;  %s4351_s29 = smov 64   ;;  %s4352_s19 = smov 88   ;;  %vm1296_vm11 = vcmask 1044480   ;;  %vm2192_vm12 = vcmask 130048  }
 0x10a   : > { %4032 = vmatprep.subr.bf16.mxu0 %v4212_v26  ;;  %v859_v33 = vunpack.c.0.s8 %v858_v30  ;;  %v3914_v35 = vld.sshfl [vmem:[#allocation2 + $0x8] sm:$0x3 pattern:$0x76325410]  ;;  %s4353_s10 = smov 120   ;;  %s4354_s22 = smov 56  }
 0x10b   : > { %v848_v27 = vld [vmem:[#allocation2] sm:$0xff]  ;;  %s4355_s5 = smov 80   ;;  %s4356_s25 = smov 112   ;;  %vm2197_vm13 = vcmask 195584   ;;  %vm2506_vm14 = vcmask 257024   ;;  %vm3045_vm15 = vcmask 523264  }
 0x10c   : > { %v856_v32 = vcombine.high %v848_v27, %v848_v27  ;;  %v4570_v36 = vsub.s32 %v859_v33, %v4567_v31  ;;  %v3915_v45 = vld.sshfl [vmem:[#allocation2 + $0x18] sm:$0x3 pattern:$0x76325410]  ;;  %s4357_s7 = smov 48   ;;  %s4358_s24 = smov 72  }
 0x10d   : > { %v850_v28 = vld [vmem:[#allocation2 + $0x10] sm:$0xff]  ;;  %4033 = vmatpush3.bf16.msra.mxu0 %v4212_v26  ;;  %vm3638_vm0 = vcmask 254976   ;;  %p3958_p5 = scmp.ne.s32.totalorder %s4478_s30, 1 }
 0x10e   : > { %v880_v34 = vcombine.high %v850_v28, %v850_v28  ;;  %v4573_v37 = vrot.slane %v848_v27, %v4570_v36  ;;  %v4576_v38 = vrot.slane %v856_v32, %v4570_v36  ;;  %v4579_v39 = vrot.slane %v850_v28, %v4570_v36  ;;  %4044 = vmatprep.subr.bf16.mxu0 %v4348_v6 }
 0x10f   : > { %vm4369_vm1 = vmmov (!%p3958_p5), 0   ;;  %vm3740_vm2 = vcmask (!%p3958_p5), 97280  }
 0x110   : > { %v4582_v40 = vrot.slane %v880_v34, %v4570_v36  ;;  %v4586_v41 = vcombine.high %v4573_v37, %v4573_v37  ;;  %v4590_v42 = vcombine.high %v4576_v38, %v4576_v38  ;;  %v4594_v43 = vcombine.high %v4579_v39, %v4579_v39 }
 0x111   : > { %v931_v44 = vcombine.low %v3914_v35, %v4579_v39 }
 0x112   : > { %v4599_v46 = vcombine.high %v4582_v40, %v4582_v40  ;;  %v914_v47 = vcombine.low %v4573_v37, %v4586_v41  ;;  %v915_v48 = vcombine.low %v4576_v38, %v4590_v42  ;;  %v932_v49 = vcombine.low %v4594_v43, %v4582_v40 }
 0x113   : > { %v939_v50 = vrot.slane %v931_v44, %v4570_v36 }
 0x114   : > { %v948_v51 = vcombine.low %v4599_v46, %v3915_v45  ;;  %v922_v52 = vrot.slane %v914_v47, %v4570_v36  ;;  %v929_v53 = vrot.slane %v915_v48, %v4570_v36  ;;  %v946_v54 = vrot.slane %v932_v49, %v4570_v36 }
 0x116   : > { %v955_v55 = vrot.slane %v948_v51, %v4570_v36  ;;  %v930_v56 = vcombine.low %v922_v52, %v929_v53  ;;  %v947_v57 = vcombine.low %v939_v50, %v946_v54 }
 0x118   : > { %v960_v58 = vpack.c.bf16 %v955_v55, %v955_v55  ;;  %v959_v59 = vpack.c.bf16 %v947_v57, %v930_v56 }
 0x11a   : > { %4034 = vmatprep.mubr.msk.bf16.mxu0 %vm984_vm6, %v959_v59 }
 0x11b   : > { %4035 = vmatmul.mubr.msk.bf16.vlgmr.msra.gmra.mrb[0].mxu0 %vm984_vm6, %v960_v58 }
 0x11c   : > { %4046 = vmatprep.mubr.msk.bf16.mxu0 %vm4349_vm7, %v4348_v6 }
 0x1ee   : > { %v4036_v61 = vpop.f32.mrb[0].mxu0 }
 0x1ef   : > { %v1025_v62 = vpop.f32.mrb[1].mxu0  ;;  %v1034_v1 = vadd.f32 %v4036_v61, %v3916_v60 }
 0x1f0   : > { %v1026_v63 = vadd.f32 %v3916_v60, %v1025_v62  ;;  %v4037_v0 = vpop.f32.mrb[2].mxu0 }
 0x1f1   : > { %v1028_v2 = vpop.f32.mrb[3].mxu0  ;;  %v1082_v11 = vrot.slane %v1034_v1, %v4570_v36 }
 0x1f2   : > { %v1042_v3 = vcombine.high %v1026_v63, %v1026_v63  ;;  %v1049_v4 = vrot.slane %v1026_v63, %v4570_v36  ;;  %v1029_v5 = vadd.f32 %v3916_v60, %v1028_v2 }
 0x1f3   : > { %v1083_v19 = vcombine.high %v1082_v11, %v1082_v11 }
 0x1f4   : > { %v1056_v7 = vrot.slane %v1042_v3, %v4570_v36  ;;  %v1057_v8 = vcombine.high %v1049_v4, %v1049_v4  ;;  %v1059_v9 = vcombine.high %v1029_v5, %v1029_v5  ;;  %v1066_v10 = vrot.slane %v1029_v5, %v4570_v36 }
 0x1f5   : > { %v1131_v27 = vrot.slane %v1083_v19, %v4570_v36 }
 0x1f6   : > { %v1058_v12 = vcombine.high %v1056_v7, %v1056_v7  ;;  %v1084_v13 = vcombine.low %v1049_v4, %v1057_v8  ;;  %v1073_v14 = vrot.slane %v1059_v9, %v4570_v36  ;;  %v1074_v15 = vcombine.high %v1066_v10, %v1066_v10 }
 0x1f7   : > { %v1107_v24 = vrot.slane %v1066_v10, %v4570_v36 }
 0x1f8   : > { %v1085_v16 = vcombine.low %v1056_v7, %v1058_v12  ;;  %v1075_v17 = vcombine.high %v1073_v14, %v1073_v14  ;;  %v1108_v18 = vcombine.low %v1074_v15, %v1073_v14  ;;  %v1092_v20 = vrot.slane %v1084_v13, %v4570_v36 }
 0x1fa   : > { %v1099_v21 = vrot.slane %v1085_v16, %v4570_v36  ;;  %v1109_v22 = vcombine.low %v1075_v17, %v1082_v11  ;;  %v1116_v25 = vrot.slane %v1108_v18, %v4570_v36 }
 0x1fc   : > { %v1100_v23 = vcombine.low %v1092_v20, %v1099_v21  ;;  %v1123_v26 = vrot.slane %v1109_v22, %v4570_v36 }
 0x1fe   : > { %v1124_v28 = vcombine.low %v1116_v25, %v1123_v26  ;;  %v4637_v29 = vpack.c.bf16 %v1107_v24, %v1100_v23 }
 0x200   : > { %v4639_v30 = vpack.c.bf16 %v1131_v27, %v1124_v28  ;;  %1139 = vrot.lane.b32.xlu0 %v4637_v29, %s4350_s0 }
 0x204   : > { %1190 = vrot.lane.b32.xlu0 %v4639_v30, %s4350_s0  ;;  %s4359_s0 = smov 104  }
 0x272   : > { %v1140_v32 = vpop.permute.xlu0 %1139 }
 0x273   : > { %v1146_v33 = vsel %vm1141_vm8, %v1140_v32, 0 }
 0x274   : > { %4039 = vmatpush3.bf16.xpose.msra.mxu1 %v1146_v33 }
 0x275   : > { %4050 = vmatprep.subr.bf16.mxu1 %v4348_v6 }
 0x276   : > { %v1191_v34 = vpop.permute.xlu0 %1190 }
 0x277   : > { %v1196_v35 = vsel %vm1141_vm8, %v1191_v34, 0 }
 0x278   : > { %4045 = vmatpush3.bf16.xpose.msra.mxu0 %v1196_v35 }
 0x279   : > { %4056 = vmatprep.subr.bf16.mxu0 %v4348_v6 }
 0x27b   : > { %4041 = vmatmul.mubr.msk.bf16.vlgmr.msra.gmra.mrb[0].mxu1 %vm1141_vm8, %v4637_v29 }
 0x27c   : > { %4052 = vmatprep.mubr.msk.bf16.mxu1 %vm4349_vm7, %v4348_v6 }
 0x27f   : > { %4047 = vmatmul.mubr.msk.bf16.vlgmr.msra.gmra.mrb[4].mxu0 %vm1141_vm8, %v4639_v30 }
 0x280   : > { %4058 = vmatprep.mubr.msk.bf16.mxu0 %vm4349_vm7, %v4348_v6 }
 0x34e   : > { %v1182_v44 = vpop.f32.mrb[0].mxu1 }
 0x34f   : > { %v1239_v45 = vmul.f32 0.35355338, %v1182_v44  ;;  %v4042_v47 = vpop.f32.mrb[1].mxu1 }
 0x350   : > { %v1185_v48 = vpop.f32.mrb[2].mxu1 }
 0x351   : > { %v1240_v49 = vmul.f32 0.35355338, %v1185_v48  ;;  %v4043_v50 = vpop.f32.mrb[3].mxu1  ;;  %v1244_v51 = vsel %vm1243_vm9, %v1239_v45, -inf }
 0x352   : > { %1245 = vmax.xlane.f32.xlu1 %v1244_v51  ;;  %v1232_v52 = vpop.f32.mrb[4].mxu0 }
 0x353   : > { %v1241_v53 = vmul.f32 0.35355338, %v1232_v52  ;;  %v4048_v54 = vpop.f32.mrb[5].mxu0  ;;  %v1248_v58 = vsel %vm1247_vm10, %v1240_v49, -inf }
 0x354   : > { %v1235_v55 = vpop.f32.mrb[6].mxu0 }
 0x355   : > { %v1242_v56 = vmul.f32 0.35355338, %v1235_v55  ;;  %v4049_v57 = vpop.f32.mrb[7].mxu0  ;;  %v1251_v59 = vsel %vm1243_vm9, %v1241_v53, -inf }
 0x356   : > { %1249 = vmax.xlane.f32.xlu1 %v1248_v58  ;;  %1252 = vmax.xlane.f32.xlu0 %v1251_v59 }
 0x357   : > { %v1254_v60 = vsel %vm1247_vm10, %v1242_v56, -inf }
 0x35a   : > { %1255 = vmax.xlane.f32.xlu1 %v1254_v60 }
 0x36b   : > { %1291 = vrot.lane.b32.xlu1 %v4637_v29, %s4351_s29 }
 0x36c   : > { %1341 = vrot.lane.b32.xlu0 %v4639_v30, %s4351_s29  ;;  %s4360_s29 = smov 40  }
 0x36f   : > { %1392 = vrot.lane.b32.xlu1 %v4637_v29, %s4352_s19 }
 0x373   : > { %1443 = vrot.lane.b32.xlu1 %v4639_v30, %s4352_s19  ;;  %s4361_s19 = smov 8  }
 0x3df   : > { %v1246_v61 = vpop.xlane.xlu1 %1245 }
 0x3e0   : > { %v1257_v62 = vsub.f32 %v1239_v45, %v1246_v61 }
 0x3e2   : > { %v1261_v63 = vmul.f32 1.442695, %v1257_v62 }
 0x3e3   : > { %v1250_v0 = vpop.xlane.xlu1 %1249  ;;  %v1253_v1 = vpop.xlane.xlu0 %1252 }
 0x3e4   : > { %4223 = vpow2.f32 %v1261_v63  ;;  %v1258_v2 = vsub.f32 %v1240_v49, %v1250_v0  ;;  %v1259_v3 = vsub.f32 %v1241_v53, %v1253_v1 }
 0x3e6   : > { %v1263_v4 = vmul.f32 1.442695, %v1258_v2  ;;  %v1265_v5 = vmul.f32 1.442695, %v1259_v3 }
 0x3e7   : > { %v1342_v7 = vpop.permute.xlu0 %1341  ;;  %v1256_v8 = vpop.xlane.xlu1 %1255 }
 0x3e8   : > { %4225 = vpow2.f32 %v1263_v4  ;;  %v1347_v9 = vsel %vm1296_vm11, %v1342_v7, 0  ;;  %v1260_v10 = vsub.f32 %v1242_v56, %v1256_v8 }
 0x3e9   : > { %4057 = vmatpush3.bf16.msra.mxu0 %v1347_v9  ;;  %4227 = vpow2.f32 %v1265_v5 }
 0x3ea   : > { %v1267_v11 = vmul.f32 1.442695, %v1260_v10  ;;  %4068 = vmatprep.subr.bf16.mxu0 %v4348_v6 }
 0x3eb   : > { %v1292_v12 = vpop.permute.xlu1 %1291 }
 0x3ec   : > { %v1298_v13 = vsel %vm1296_vm11, %v1292_v12, 0  ;;  %4229 = vpow2.f32 %v1267_v11 }
 0x3ed   : > { %4051 = vmatpush3.bf16.msra.mxu1 %v1298_v13 }
 0x3ee   : > { %v4224_v14 = vpop.eup %4223  ;;  %4062 = vmatprep.subr.bf16.mxu1 %v4348_v6 }
 0x3ef   : > { %v1269_v15 = vsel %vm1243_vm9, %v4224_v14, 0.0  ;;  %v1393_v22 = vpop.permute.xlu1 %1392 }
 0x3f0   : > { %1270 = vadd.xlane.f32.xlu1 %v1269_v15  ;;  %v1398_v44 = vsel %vm1141_vm8, %v1393_v22, 0 }
 0x3f2   : > { %v4226_v16 = vpop.eup %4225 }
 0x3f3   : > { %v1272_v17 = vsel %vm1247_vm10, %v4226_v16, 0.0  ;;  %v4228_v18 = vpop.eup %4227  ;;  %v1444_v23 = vpop.permute.xlu1 %1443 }
 0x3f4   : > { %1273 = vadd.xlane.f32.xlu1 %v1272_v17  ;;  %v1275_v19 = vsel %vm1243_vm9, %v4228_v18, 0.0  ;;  %v1449_v52 = vsel %vm1141_vm8, %v1444_v23, 0 }
 0x3f6   : > { %v4230_v20 = vpop.eup %4229 }
 0x3f7   : > { %v1278_v21 = vsel %vm1247_vm10, %v4230_v20, 0.0 }
 0x3f8   : > { %1276 = vadd.xlane.f32.xlu1 %v1275_v19 }
 0x3fc   : > { %1279 = vadd.xlane.f32.xlu1 %v1278_v21 }
 0x40d   : > { %1390 = vrot.lane.b32.xlu1 %v4637_v29, %s4353_s10 }
 0x411   : > { %1441 = vrot.lane.b32.xlu1 %v4639_v30, %s4353_s10  ;;  %s4362_s10 = smov 16  }
 0x47d   : > { %v1271_v24 = vpop.xlane.xlu1 %1270 }
 0x47e   : > { %4231 = vrcp.f32 %v1271_v24 }
 0x481   : > { %v1274_v25 = vpop.xlane.xlu1 %1273 }
 0x482   : > { %4233 = vrcp.f32 %v1274_v25 }
 0x485   : > { %v1277_v26 = vpop.xlane.xlu1 %1276 }
 0x486   : > { %4235 = vrcp.f32 %v1277_v26 }
 0x488   : > { %v4232_v28 = vpop.eup %4231 }
 0x489   : > { %v1280_v27 = vpop.xlane.xlu1 %1279  ;;  %v1285_v33 = vmul.f32 %v4232_v28, %v4224_v14 }
 0x48a   : > { %4237 = vrcp.f32 %v1280_v27 }
 0x48c   : > { %v4234_v32 = vpop.eup %4233 }
 0x48d   : > { %v1286_v34 = vmul.f32 %v4234_v32, %v4226_v16  ;;  %v1391_v51 = vpop.permute.xlu1 %1390 }
 0x48f   : > { %v1289_v35 = vpack.c.bf16 %v1286_v34, %v1285_v33 }
 0x490   : > { %v4236_v45 = vpop.eup %4235 }
 0x491   : > { %4053 = vmatmul.mubr.msk.bf16.vlgmr.msra.gmra.mrb[4].mxu1 %vm1243_vm9, %v1289_v35  ;;  %v1287_v48 = vmul.f32 %v4236_v45, %v4228_v18  ;;  %v1442_v53 = vpop.permute.xlu1 %1441 }
 0x492   : > { %4063 = vmatpush3.bf16.xpose.msra.mxu1 %v1398_v44  ;;  %4064 = vmatprep.mubr.msk.bf16.mxu1 %vm4349_vm7, %v4348_v6 }
 0x493   : > { %4074 = vmatprep.subr.bf16.mxu1 %v4348_v6 }
 0x494   : > { %v4238_v47 = vpop.eup %4237 }
 0x495   : > { %v1288_v49 = vmul.f32 %v4238_v47, %v4230_v20 }
 0x497   : > { %v1290_v50 = vpack.c.bf16 %v1288_v49, %v1287_v48 }
 0x499   : > { %4059 = vmatmul.mubr.msk.bf16.vlgmr.msra.gmra.mrb[8].mxu0 %vm1243_vm9, %v1290_v50  ;;  %4065 = vmatmul.mubr.msk.bf16.vlgmr.msra.gmra.mrb[8].mxu1 %vm1141_vm8, %v1391_v51 }
 0x49a   : > { %4069 = vmatpush3.bf16.xpose.msra.mxu0 %v1449_v52  ;;  %4070 = vmatprep.mubr.msk.bf16.mxu0 %vm4349_vm7, %v4348_v6 }
 0x49b   : > { %4076 = vmatprep.mubr.msk.bf16.mxu1 %vm4349_vm7, %v4348_v6  ;;  %4080 = vmatprep.subr.bf16.mxu0 %v4348_v6 }
 0x4a1   : > { %4071 = vmatmul.mubr.msk.bf16.vlgmr.msra.gmra.mrb[12].mxu0 %vm1141_vm8, %v1442_v53 }
 0x4a2   : > { %4082 = vmatprep.mubr.msk.bf16.mxu0 %vm4349_vm7, %v4348_v6 }
 0x564   : > { %v4689_v54 = vpop.f32.mrb[4].mxu1 }
 0x565   : > { %v4054_v55 = vpop.f32.mrb[5].mxu1 }
 0x566   : > { %v4691_v56 = vpop.f32.mrb[6].mxu1 }
 0x567   : > { %v4055_v57 = vpop.f32.mrb[7].mxu1 }
 0x56c   : > { %v4693_v58 = vpop.f32.mrb[8].mxu0  ;;  %v1434_v59 = vpop.f32.mrb[8].mxu1 }
 0x56d   : > { %v1492_v60 = vmul.f32 0.35355338, %v1434_v59  ;;  %v4060_v61 = vpop.f32.mrb[9].mxu0  ;;  %v4066_v62 = vpop.f32.mrb[9].mxu1 }
 0x56e   : > { %v4695_v63 = vpop.f32.mrb[10].mxu0  ;;  %v1437_v0 = vpop.f32.mrb[10].mxu1 }
 0x56f   : > { %v1493_v1 = vmul.f32 0.35355338, %v1437_v0  ;;  %v4061_v2 = vpop.f32.mrb[11].mxu0  ;;  %v4067_v3 = vpop.f32.mrb[11].mxu1  ;;  %v1496_v4 = vsel %vm1243_vm9, %v1492_v60, -inf }
 0x570   : > { %1497 = vmax.xlane.f32.xlu0 %v1496_v4 }
 0x571   : > { %v1499_v5 = vsel %vm1247_vm10, %v1493_v1, -inf }
 0x572   : > { %1500 = vmax.xlane.f32.xlu1 %v1499_v5 }
 0x574   : > { %v1485_v7 = vpop.f32.mrb[12].mxu0 }
 0x575   : > { %v1494_v8 = vmul.f32 0.35355338, %v1485_v7  ;;  %v4072_v9 = vpop.f32.mrb[13].mxu0 }
 0x576   : > { %v1488_v10 = vpop.f32.mrb[14].mxu0 }
 0x577   : > { %v1495_v11 = vmul.f32 0.35355338, %v1488_v10  ;;  %v4073_v12 = vpop.f32.mrb[15].mxu0  ;;  %v1502_v13 = vsel %vm1243_vm9, %v1494_v8, -inf }
 0x578   : > { %1503 = vmax.xlane.f32.xlu0 %v1502_v13 }
 0x579   : > { %v1505_v14 = vsel %vm1247_vm10, %v1495_v11, -inf }
 0x57c   : > { %1506 = vmax.xlane.f32.xlu0 %v1505_v14 }
 0x583   : > { %1542 = vrot.lane.b32.xlu1 %v4637_v29, %s4354_s22 }
 0x5fd   : > { %v1498_v15 = vpop.xlane.xlu0 %1497 }
 0x5fe   : > { %v1508_v16 = vsub.f32 %v1492_v60, %v1498_v15 }
 0x5ff   : > { %v1501_v17 = vpop.xlane.xlu1 %1500 }
 0x600   : > { %v1512_v18 = vmul.f32 1.442695, %v1508_v16  ;;  %v1509_v19 = vsub.f32 %v1493_v1, %v1501_v17 }
 0x602   : > { %4239 = vpow2.f32 %v1512_v18  ;;  %v1514_v20 = vmul.f32 1.442695, %v1509_v19 }
 0x603   : > { %v1543_v21 = vpop.permute.xlu1 %1542 }
 0x604   : > { %4241 = vpow2.f32 %v1514_v20  ;;  %v1548_v22 = vsel %vm1296_vm11, %v1543_v21, 0 }
 0x605   : > { %4075 = vmatpush3.bf16.msra.mxu1 %v1548_v22  ;;  %v1504_v23 = vpop.xlane.xlu0 %1503 }
 0x606   : > { %v1510_v24 = vsub.f32 %v1494_v8, %v1504_v23  ;;  %4086 = vmatprep.subr.bf16.mxu1 %v4348_v6 }
 0x608   : > { %v1516_v25 = vmul.f32 1.442695, %v1510_v24 }
 0x609   : > { %v1507_v26 = vpop.xlane.xlu0 %1506 }
 0x60a   : > { %4243 = vpow2.f32 %v1516_v25  ;;  %v1511_v27 = vsub.f32 %v1495_v11, %v1507_v26 }
 0x60c   : > { %v4240_v28 = vpop.eup %4239  ;;  %v1518_v32 = vmul.f32 1.442695, %v1511_v27 }
 0x60d   : > { %v1520_v33 = vsel %vm1243_vm9, %v4240_v28, 0.0 }
 0x60e   : > { %v4242_v34 = vpop.eup %4241  ;;  %4245 = vpow2.f32 %v1518_v32  ;;  %1521 = vadd.xlane.f32.xlu1 %v1520_v33 }
 0x60f   : > { %v1523_v35 = vsel %vm1247_vm10, %v4242_v34, 0.0 }
 0x610   : > { %1524 = vadd.xlane.f32.xlu0 %v1523_v35 }
 0x614   : > { %v4244_v44 = vpop.eup %4243 }
 0x615   : > { %v1526_v45 = vsel %vm1243_vm9, %v4244_v44, 0.0 }
 0x616   : > { %1527 = vadd.xlane.f32.xlu1 %v1526_v45 }
 0x618   : > { %v4246_v47 = vpop.eup %4245 }
 0x619   : > { %v1529_v48 = vsel %vm1247_vm10, %v4246_v47, 0.0 }
 0x61a   : > { %1530 = vadd.xlane.f32.xlu0 %v1529_v48 }
 0x627   : > { %1642 = vrot.lane.b32.xlu1 %v4637_v29, %s4355_s5 }
 0x62b   : > { %1693 = vrot.lane.b32.xlu1 %v4639_v30, %s4355_s5 }
 0x62f   : > { %1691 = vrot.lane.b32.xlu1 %v4639_v30, %s4356_s25 }
 0x630   : > { %1591 = vrot.lane.b32.xlu0 %v4639_v30, %s4354_s22  ;;  %s4363_s22 = smov 24  }
 0x634   : > { %1640 = vrot.lane.b32.xlu0 %v4637_v29, %s4356_s25  ;;  %s5252_s25 = scalar_lea.vmem %s5213_s8, %s4484_s20 }
 0x69b   : > { %v1522_v49 = vpop.xlane.xlu1 %1521 }
 0x69c   : > { %4247 = vrcp.f32 %v1522_v49 }
 0x69d   : > { %v1525_v50 = vpop.xlane.xlu0 %1524 }
 0x69e   : > { %4249 = vrcp.f32 %v1525_v50 }
 0x6a3   : > { %v1528_v51 = vpop.xlane.xlu1 %1527 }
 0x6a4   : > { %4251 = vrcp.f32 %v1528_v51 }
 0x6a6   : > { %v4248_v52 = vpop.eup %4247 }
 0x6a7   : > { %v1531_v53 = vpop.xlane.xlu0 %1530  ;;  %v1536_v57 = vmul.f32 %v4248_v52, %v4240_v28  ;;  %v1643_v60 = vpop.permute.xlu1 %1642 }
 0x6a8   : > { %v4250_v55 = vpop.eup %4249  ;;  %4253 = vrcp.f32 %v1531_v53  ;;  %v1648_v1 = vsel %vm1141_vm8, %v1643_v60, 0 }
 0x6a9   : > { %v1537_v59 = vmul.f32 %v4250_v55, %v4242_v34 }
 0x6ab   : > { %v1592_v61 = vpop.permute.xlu0 %1591  ;;  %v1540_v62 = vpack.c.bf16 %v1537_v59, %v1536_v57  ;;  %v1694_v7 = vpop.permute.xlu1 %1693 }
 0x6ac   : > { %v1597_v0 = vsel %vm1296_vm11, %v1592_v61, 0  ;;  %v1699_v10 = vsel %vm1141_vm8, %v1694_v7, 0 }
 0x6ad   : > { %4077 = vmatmul.mubr.msk.bf16.vlgmr.msra.gmra.mrb[12].mxu1 %vm1243_vm9, %v1540_v62  ;;  %4081 = vmatpush3.bf16.msra.mxu0 %v1597_v0 }
 0x6ae   : > { %4087 = vmatpush3.bf16.xpose.msra.mxu1 %v1648_v1  ;;  %4088 = vmatprep.mubr.msk.bf16.mxu1 %vm4349_vm7, %v4348_v6  ;;  %v4252_v2 = vpop.eup %4251 }
 0x6af   : > { %4092 = vmatprep.subr.bf16.mxu0 %v4348_v6  ;;  %4098 = vmatprep.subr.bf16.mxu1 %v4348_v6  ;;  %v1538_v4 = vmul.f32 %v4252_v2, %v4244_v44  ;;  %v1641_v8 = vpop.permute.xlu0 %1640  ;;  %v1692_v11 = vpop.permute.xlu1 %1691 }
 0x6b2   : > { %v4254_v3 = vpop.eup %4253 }
 0x6b3   : > { %v1539_v5 = vmul.f32 %v4254_v3, %v4246_v47 }
 0x6b5   : > { %4089 = vmatmul.mubr.msk.bf16.vlgmr.msra.gmra.mrb[16].mxu1 %vm1141_vm8, %v1641_v8  ;;  %v1541_v9 = vpack.c.bf16 %v1539_v5, %v1538_v4 }
 0x6b6   : > { %4100 = vmatprep.mubr.msk.bf16.mxu1 %vm4349_vm7, %v4348_v6 }
 0x6b7   : > { %4083 = vmatmul.mubr.msk.bf16.vlgmr.msra.gmra.mrb[16].mxu0 %vm1243_vm9, %v1541_v9 }
 0x6b8   : > { %4093 = vmatpush3.bf16.xpose.msra.mxu0 %v1699_v10  ;;  %4094 = vmatprep.mubr.msk.bf16.mxu0 %vm4349_vm7, %v4348_v6 }
 0x6b9   : > { %4104 = vmatprep.subr.bf16.mxu0 %v4348_v6 }
 0x6bf   : > { %4095 = vmatmul.mubr.msk.bf16.vlgmr.msra.gmra.mrb[20].mxu0 %vm1141_vm8, %v1692_v11 }
 0x6c0   : > { %4106 = vmatprep.mubr.msk.bf16.mxu0 %vm4349_vm7, %v4348_v6 }
 0x780   : > { %v4733_v12 = vpop.f32.mrb[12].mxu1 }
 0x781   : > { %v4078_v13 = vpop.f32.mrb[13].mxu1 }
 0x782   : > { %v4735_v14 = vpop.f32.mrb[14].mxu1 }
 0x783   : > { %v4079_v15 = vpop.f32.mrb[15].mxu1 }
 0x788   : > { %v1684_v16 = vpop.f32.mrb[16].mxu1 }
 0x789   : > { %v1742_v17 = vmul.f32 0.35355338, %v1684_v16  ;;  %v4090_v18 = vpop.f32.mrb[17].mxu1 }
 0x78a   : > { %v4737_v19 = vpop.f32.mrb[16].mxu0  ;;  %v1687_v20 = vpop.f32.mrb[18].mxu1 }
 0x78b   : > { %v1743_v21 = vmul.f32 0.35355338, %v1687_v20  ;;  %v4084_v22 = vpop.f32.mrb[17].mxu0  ;;  %v4091_v23 = vpop.f32.mrb[19].mxu1  ;;  %v1746_v24 = vsel %vm1243_vm9, %v1742_v17, -inf }
 0x78c   : > { %1747 = vmax.xlane.f32.xlu0 %v1746_v24  ;;  %v4740_v25 = vpop.f32.mrb[18].mxu0 }
 0x78d   : > { %v4085_v26 = vpop.f32.mrb[19].mxu0  ;;  %v1749_v27 = vsel %vm1247_vm10, %v1743_v21, -inf }
 0x78e   : > { %1750 = vmax.xlane.f32.xlu1 %v1749_v27 }
 0x792   : > { %v1735_v28 = vpop.f32.mrb[20].mxu0 }
 0x793   : > { %v1744_v32 = vmul.f32 0.35355338, %v1735_v28  ;;  %v4096_v33 = vpop.f32.mrb[21].mxu0 }
 0x794   : > { %v1738_v34 = vpop.f32.mrb[22].mxu0 }
 0x795   : > { %v1745_v35 = vmul.f32 0.35355338, %v1738_v34  ;;  %v4097_v44 = vpop.f32.mrb[23].mxu0  ;;  %v1752_v45 = vsel %vm1243_vm9, %v1744_v32, -inf }
 0x796   : > { %1753 = vmax.xlane.f32.xlu0 %v1752_v45 }
 0x797   : > { %v1755_v47 = vsel %vm1247_vm10, %v1745_v35, -inf }
 0x79a   : > { %1756 = vmax.xlane.f32.xlu0 %v1755_v47 }
 0x79f   : > { %1792 = vrot.lane.b32.xlu1 %v4637_v29, %s4357_s7 }
 0x819   : > { %v1748_v48 = vpop.xlane.xlu0 %1747 }
 0x81a   : > { %v1758_v49 = vsub.f32 %v1742_v17, %v1748_v48 }
 0x81b   : > { %v1751_v50 = vpop.xlane.xlu1 %1750 }
 0x81c   : > { %v1762_v51 = vmul.f32 1.442695, %v1758_v49  ;;  %v1759_v52 = vsub.f32 %v1743_v21, %v1751_v50 }
 0x81e   : > { %4255 = vpow2.f32 %v1762_v51  ;;  %v1764_v53 = vmul.f32 1.442695, %v1759_v52 }
 0x81f   : > { %v1793_v55 = vpop.permute.xlu1 %1792 }
 0x820   : > { %4257 = vpow2.f32 %v1764_v53  ;;  %v1798_v57 = vsel %vm1296_vm11, %v1793_v55, 0 }
 0x821   : > { %4099 = vmatpush3.bf16.msra.mxu1 %v1798_v57 }
 0x822   : > { %4110 = vmatprep.subr.bf16.mxu1 %v4348_v6 }
 0x823   : > { %v1754_v59 = vpop.xlane.xlu0 %1753 }
 0x824   : > { %v1760_v60 = vsub.f32 %v1744_v32, %v1754_v59 }
 0x826   : > { %v1766_v61 = vmul.f32 1.442695, %v1760_v60 }
 0x827   : > { %v1757_v62 = vpop.xlane.xlu0 %1756 }
 0x828   : > { %v4256_v0 = vpop.eup %4255  ;;  %4259 = vpow2.f32 %v1766_v61  ;;  %v1761_v1 = vsub.f32 %v1745_v35, %v1757_v62 }
 0x829   : > { %v1770_v2 = vsel %vm1243_vm9, %v4256_v0, 0.0 }
 0x82a   : > { %v4258_v3 = vpop.eup %4257  ;;  %v1768_v4 = vmul.f32 1.442695, %v1761_v1  ;;  %1771 = vadd.xlane.f32.xlu1 %v1770_v2 }
 0x82b   : > { %v1773_v5 = vsel %vm1247_vm10, %v4258_v3, 0.0 }
 0x82c   : > { %4261 = vpow2.f32 %v1768_v4  ;;  %1774 = vadd.xlane.f32.xlu0 %v1773_v5 }
 0x832   : > { %v4260_v7 = vpop.eup %4259 }
 0x833   : > { %v1776_v8 = vsel %vm1243_vm9, %v4260_v7, 0.0 }
 0x834   : > { %1777 = vadd.xlane.f32.xlu1 %v1776_v8 }
 0x836   : > { %v4262_v9 = vpop.eup %4261 }
 0x837   : > { %v1779_v10 = vsel %vm1247_vm10, %v4262_v9, 0.0 }
 0x838   : > { %1780 = vadd.xlane.f32.xlu0 %v1779_v10 }
 0x845   : > { %1892 = vrot.lane.b32.xlu1 %v4637_v29, %s4358_s24 }
 0x849   : > { %1943 = vrot.lane.b32.xlu1 %v4639_v30, %s4358_s24 }
 0x84d   : > { %1941 = vrot.lane.b32.xlu1 %v4639_v30, %s4359_s0 }
 0x84e   : > { %1841 = vrot.lane.b32.xlu0 %v4639_v30, %s4357_s7 }
 0x852   : > { %1890 = vrot.lane.b32.xlu0 %v4637_v29, %s4359_s0 }
 0x8b7   : > { %v1772_v11 = vpop.xlane.xlu1 %1771 }
 0x8b8   : > { %4263 = vrcp.f32 %v1772_v11 }
 0x8b9   : > { %v1775_v13 = vpop.xlane.xlu0 %1774 }
 0x8ba   : > { %4265 = vrcp.f32 %v1775_v13 }
 0x8c1   : > { %v1778_v15 = vpop.xlane.xlu1 %1777 }
 0x8c2   : > { %v4264_v16 = vpop.eup %4263  ;;  %4267 = vrcp.f32 %v1778_v15 }
 0x8c3   : > { %v1786_v18 = vmul.f32 %v4264_v16, %v4256_v0 }
 0x8c4   : > { %v4266_v17 = vpop.eup %4265 }
 0x8c5   : > { %v1787_v20 = vmul.f32 %v4266_v17, %v4258_v3  ;;  %v1781_v21 = vpop.xlane.xlu0 %1780  ;;  %v1893_v22 = vpop.permute.xlu1 %1892 }
 0x8c6   : > { %4269 = vrcp.f32 %v1781_v21  ;;  %v1898_v24 = vsel %vm1141_vm8, %v1893_v22, 0 }
 0x8c7   : > { %v1790_v23 = vpack.c.bf16 %v1787_v20, %v1786_v18 }
 0x8c9   : > { %4101 = vmatmul.mubr.msk.bf16.vlgmr.msra.gmra.mrb[20].mxu1 %vm1243_vm9, %v1790_v23  ;;  %v1842_v26 = vpop.permute.xlu0 %1841  ;;  %v1944_v44 = vpop.permute.xlu1 %1943 }
 0x8ca   : > { %4111 = vmatpush3.bf16.xpose.msra.mxu1 %v1898_v24  ;;  %v1847_v27 = vsel %vm1296_vm11, %v1842_v26, 0  ;;  %4112 = vmatprep.mubr.msk.bf16.mxu1 %vm4349_vm7, %v4348_v6  ;;  %v1949_v47 = vsel %vm1141_vm8, %v1944_v44, 0 }
 0x8cb   : > { %4105 = vmatpush3.bf16.msra.mxu0 %v1847_v27  ;;  %4122 = vmatprep.subr.bf16.mxu1 %v4348_v6 }
 0x8cc   : > { %4116 = vmatprep.subr.bf16.mxu0 %v4348_v6  ;;  %v4268_v28 = vpop.eup %4267 }
 0x8cd   : > { %v1891_v33 = vpop.permute.xlu0 %1890  ;;  %v1788_v34 = vmul.f32 %v4268_v28, %v4260_v7  ;;  %v1942_v48 = vpop.permute.xlu1 %1941 }
 0x8d0   : > { %v4270_v32 = vpop.eup %4269 }
 0x8d1   : > { %v1789_v35 = vmul.f32 %v4270_v32, %v4262_v9  ;;  %4113 = vmatmul.mubr.msk.bf16.vlgmr.msra.gmra.mrb[24].mxu1 %vm1141_vm8, %v1891_v33 }
 0x8d2   : > { %4124 = vmatprep.mubr.msk.bf16.mxu1 %vm4349_vm7, %v4348_v6 }
 0x8d3   : > { %v1791_v45 = vpack.c.bf16 %v1789_v35, %v1788_v34 }
 0x8d5   : > { %4107 = vmatmul.mubr.msk.bf16.vlgmr.msra.gmra.mrb[24].mxu0 %vm1243_vm9, %v1791_v45 }
 0x8d6   : > { %4117 = vmatpush3.bf16.xpose.msra.mxu0 %v1949_v47  ;;  %4118 = vmatprep.mubr.msk.bf16.mxu0 %vm4349_vm7, %v4348_v6 }
 0x8d7   : > { %4128 = vmatprep.subr.bf16.mxu0 %v4348_v6 }
 0x8dd   : > { %4119 = vmatmul.mubr.msk.bf16.vlgmr.msra.gmra.mrb[28].mxu0 %vm1141_vm8, %v1942_v48 }
 0x8de   : > { %4130 = vmatprep.mubr.msk.bf16.mxu0 %vm4349_vm7, %v4348_v6 }
 0x99c   : > { %v1834_v49 = vpop.f32.mrb[20].mxu1 }
 0x99d   : > { %v4102_v50 = vpop.f32.mrb[21].mxu1 }
 0x99e   : > { %v1837_v51 = vpop.f32.mrb[22].mxu1 }
 0x99f   : > { %v4103_v52 = vpop.f32.mrb[23].mxu1 }
 0x9a4   : > { %v1934_v53 = vpop.f32.mrb[24].mxu1 }
 0x9a5   : > { %v1992_v55 = vmul.f32 0.35355338, %v1934_v53  ;;  %v4114_v57 = vpop.f32.mrb[25].mxu1 }
 0x9a6   : > { %v1937_v59 = vpop.f32.mrb[26].mxu1 }
 0x9a7   : > { %v1993_v60 = vmul.f32 0.35355338, %v1937_v59  ;;  %v4115_v61 = vpop.f32.mrb[27].mxu1  ;;  %v1996_v62 = vsel %vm1243_vm9, %v1992_v55, -inf }
 0x9a8   : > { %1997 = vmax.xlane.f32.xlu0 %v1996_v62  ;;  %v1883_v0 = vpop.f32.mrb[24].mxu0 }
 0x9a9   : > { %v4108_v1 = vpop.f32.mrb[25].mxu0  ;;  %v1999_v2 = vsel %vm1247_vm10, %v1993_v60, -inf }
 0x9aa   : > { %2000 = vmax.xlane.f32.xlu1 %v1999_v2  ;;  %v4779_v3 = vpop.f32.mrb[26].mxu0 }
 0x9ab   : > { %v4109_v6 = vpop.f32.mrb[27].mxu0 }
 0x9b0   : > { %v1985_v4 = vpop.f32.mrb[28].mxu0 }
 0x9b1   : > { %v1994_v5 = vmul.f32 0.35355338, %v1985_v4  ;;  %v4120_v7 = vpop.f32.mrb[29].mxu0 }
 0x9b2   : > { %v1988_v8 = vpop.f32.mrb[30].mxu0  ;;  %v4215_v7 = vld [vmem:[%s4499_s27] sm:$0xff]  }
 0x9b3   : > { %v1995_v9 = vmul.f32 0.35355338, %v1988_v8  ;;  %v4121_v10 = vpop.f32.mrb[31].mxu0  ;;  %v2002_v11 = vsel %vm1243_vm9, %v1994_v5, -inf }
 0x9b4   : > { %2003 = vmax.xlane.f32.xlu0 %v2002_v11  ;;  %v4216_v10 = vld [vmem:[%s4499_s27 + $0x8] sm:$0xff]  }
 0x9b5   : > { %v2005_v13 = vsel %vm1247_vm10, %v1995_v9, -inf }
 0x9b8   : > { %2006 = vmax.xlane.f32.xlu0 %v2005_v13 }
 0xa35   : > { %v1998_v15 = vpop.xlane.xlu0 %1997 }
 0xa36   : > { %v2008_v16 = vsub.f32 %v1992_v55, %v1998_v15 }
 0xa37   : > { %v2001_v17 = vpop.xlane.xlu1 %2000 }
 0xa38   : > { %v2012_v18 = vmul.f32 1.442695, %v2008_v16  ;;  %v2009_v20 = vsub.f32 %v1993_v60, %v2001_v17 }
 0xa3a   : > { %4271 = vpow2.f32 %v2012_v18  ;;  %v2014_v21 = vmul.f32 1.442695, %v2009_v20 }
 0xa3c   : > { %4273 = vpow2.f32 %v2014_v21 }
 0xa41   : > { %v2004_v22 = vpop.xlane.xlu0 %2003 }
 0xa42   : > { %v2010_v23 = vsub.f32 %v1994_v5, %v2004_v22 }
 0xa44   : > { %v4272_v24 = vpop.eup %4271  ;;  %v2016_v26 = vmul.f32 1.442695, %v2010_v23 }
 0xa45   : > { %v2007_v27 = vpop.xlane.xlu0 %2006  ;;  %v2020_v28 = vsel %vm1243_vm9, %v4272_v24, 0.0 }
 0xa46   : > { %v4274_v32 = vpop.eup %4273  ;;  %4275 = vpow2.f32 %v2016_v26  ;;  %v2011_v33 = vsub.f32 %v1995_v9, %v2007_v27  ;;  %2021 = vadd.xlane.f32.xlu1 %v2020_v28 }
 0xa47   : > { %v2023_v34 = vsel %vm1247_vm10, %v4274_v32, 0.0 }
 0xa48   : > { %v2018_v35 = vmul.f32 1.442695, %v2011_v33  ;;  %2024 = vadd.xlane.f32.xlu0 %v2023_v34 }
 0xa4a   : > { %4277 = vpow2.f32 %v2018_v35 }
 0xa50   : > { %v4276_v44 = vpop.eup %4275 }
 0xa51   : > { %v2026_v45 = vsel %vm1243_vm9, %v4276_v44, 0.0 }
 0xa52   : > { %2027 = vadd.xlane.f32.xlu1 %v2026_v45 }
 0xa54   : > { %v4278_v47 = vpop.eup %4277 }
 0xa55   : > { %v2029_v48 = vsel %vm1247_vm10, %v4278_v47, 0.0 }
 0xa56   : > { %2030 = vadd.xlane.f32.xlu0 %v2029_v48 }
 0xa63   : > { %2042 = vrot.lane.b32.xlu1 %v4637_v29, %s4360_s29 }
 0xa67   : > { %2144 = vrot.lane.b32.xlu1 %v4733_v12, %s4361_s19 }
 0xa6b   : > { %2160 = vrot.lane.b32.xlu1 %v1834_v49, %s4362_s10 }
 0xa6c   : > { %2091 = vrot.lane.b32.xlu0 %v4639_v30, %s4360_s29  ;;  %s5253_s29 = sld [smem:[#allocation14_spill]] }
 0xa6f   : > { %2146 = vrot.lane.b32.xlu1 %v4735_v14, %s4361_s19 }
 0xa70   : > { %2148 = vrot.lane.b32.xlu0 %v4737_v19, %s4361_s19 }
 0xa73   : > { %2162 = vrot.lane.b32.xlu1 %v1837_v51, %s4362_s10 }
 0xa74   : > { %2164 = vrot.lane.b32.xlu0 %v1883_v0, %s4362_s10 }
 0xad3   : > { %v2022_v29 = vpop.xlane.xlu1 %2021 }
 0xad5   : > { %v2025_v50 = vpop.xlane.xlu0 %2024 }
 0xad6   : > { %4279 = vrcp.f32 %v2025_v50 }
 0xad7   : > { %4281 = vrcp.f32 %v2022_v29 }
 0xadf   : > { %v2028_v12 = vpop.xlane.xlu1 %2027 }
 0xae0   : > { %v4280_v52 = vpop.eup %4279  ;;  %4283 = vrcp.f32 %v2028_v12 }
 0xae1   : > { %v4282_v53 = vpop.eup %4281  ;;  %v2037_v49 = vmul.f32 %v4280_v52, %v4274_v32 }
 0xae2   : > { %v2036_v57 = vmul.f32 %v4282_v53, %v4272_v24 }
 0xae3   : > { %v2043_v30 = vpop.permute.xlu1 %2042  ;;  %v2031_v55 = vpop.xlane.xlu0 %2030 }
 0xae4   : > { %v2048_v14 = vsel %vm1296_vm11, %v2043_v30, 0  ;;  %4285 = vrcp.f32 %v2031_v55  ;;  %v2040_v19 = vpack.c.bf16 %v2037_v49, %v2036_v57 }
 0xae5   : > { %4123 = vmatpush3.bf16.msra.mxu1 %v2048_v14 }
 0xae6   : > { %4134 = vmatprep.subr.bf16.mxu1 %v4215_v7 }
 0xae7   : > { %v2092_v51 = vpop.permute.xlu0 %2091  ;;  %v2145_v15 = vpop.permute.xlu1 %2144 }
 0xae8   : > { %v2097_v59 = vsel %vm1296_vm11, %v2092_v51, 0  ;;  %4125 = vmatmul.mubr.msk.bf16.vlgmr.msra.gmra.mrb[28].mxu1 %vm1243_vm9, %v2040_v19  ;;  %v2188_v18 = vsel %vm1141_vm8, %v4689_v54, %v2145_v15 }
 0xae9   : > { %4129 = vmatpush3.bf16.msra.mxu0 %v2097_v59  ;;  %4135 = vmatpush3.bf16.msra.mxu1 %v4215_v7 }
 0xaea   : > { %v4284_v60 = vpop.eup %4283  ;;  %4136 = vmatprep.subr.bf16.mxu1 %v4216_v10 }
 0xaeb   : > { %v2038_v62 = vmul.f32 %v4284_v60, %v4276_v44  ;;  %v2161_v16 = vpop.permute.xlu1 %2160  ;;  %v2149_v22 = vpop.permute.xlu0 %2148 }
 0xaec   : > { %v2193_v20 = vsel %vm2192_vm12, %v2188_v18, %v2161_v16  ;;  %v2190_v28 = vsel %vm1141_vm8, %v4693_v58, %v2149_v22 }
 0xaed   : > { %4137 = vmatpush3.bf16.msra.mxu1 %v4216_v10 }
 0xaee   : > { %v4286_v61 = vpop.eup %4285 }
 0xaef   : > { %v2039_v0 = vmul.f32 %v4286_v61, %v4278_v47  ;;  %v2147_v17 = vpop.permute.xlu1 %2146  ;;  %v2165_v26 = vpop.permute.xlu0 %2164 }
 0xaf0   : > { %v2195_v32 = vsel %vm2192_vm12, %v2190_v28, %v2165_v26  ;;  %v2189_v47 = vsel %vm1141_vm8, %v4691_v56, %v2147_v17 }
 0xaf1   : > { %v2041_v1 = vpack.c.bf16 %v2039_v0, %v2038_v62 }
 0xaf3   : > { %4131 = vmatmul.mubr.msk.bf16.vlgmr.msra.gmra.mrb[32].mxu0 %vm1243_vm9, %v2041_v1 }
 0xbbb   : > { %v2084_v2 = vpop.f32.mrb[28].mxu1 }
 0xbbc   : > { %2176 = vrot.lane.b32.xlu1 %v2084_v2, %s4363_s22  ;;  %v4126_v6 = vpop.f32.mrb[29].mxu1 }
 0xbbd   : > { %v2087_v4 = vpop.f32.mrb[30].mxu1 }
 0xbbe   : > { %v4127_v5 = vpop.f32.mrb[31].mxu1 }
 0xbc0   : > { %2150 = vrot.lane.b32.xlu1 %v4740_v25, %s4361_s19  ;;  %v2163_v25 = vpop.permute.xlu1 %2162 }
 0xbc1   : > { %v2194_v48 = vsel %vm2192_vm12, %v2189_v47, %v2163_v25 }
 0xbc6   : > { %v2133_v8 = vpop.f32.mrb[32].mxu0 }
 0xbc7   : > { %2180 = vrot.lane.b32.xlu0 %v2133_v8, %s4363_s22  ;;  %v4132_v9 = vpop.f32.mrb[33].mxu0 }
 0xbc8   : > { %v2136_v11 = vpop.f32.mrb[34].mxu0  ;;  %v3937_v9 = vld [vmem:[%s5252_s25] ss:$0 sm:$0xff] }
 0xbc9   : > { %2182 = vrot.lane.b32.xlu1 %v2136_v11, %s4363_s22  ;;  %v4133_v13 = vpop.f32.mrb[35].mxu0 }
 0xbcb   : > { %2178 = vrot.lane.b32.xlu0 %v2087_v4, %s4363_s22 }
 0xbcf   : > { %2166 = vrot.lane.b32.xlu0 %v4779_v3, %s4362_s10  ;;  %s5254_s10 = scalar_lea.vmem %s5253_s29, %s4484_s20 }
 0xc2e   : > { %v2177_v21 = vpop.permute.xlu1 %2176 }
 0xc2f   : > { %v2198_v23 = vsel %vm2197_vm13, %v2193_v20, %v2177_v21 }
 0xc30   : > { %v2206_v24 = vcombine.high %v2198_v23, %v2198_v23  ;;  %v2213_v3 = vrot.slane %v2198_v23, %v4570_v36 }
 0xc32   : > { %v2220_v27 = vrot.slane %v2206_v24, %v4570_v36  ;;  %v2221_v35 = vcombine.high %v2213_v3, %v2213_v3  ;;  %v2151_v52 = vpop.permute.xlu1 %2150 }
 0xc33   : > { %v2191_v14 = vsel %vm1141_vm8, %v4695_v63, %v2151_v52 }
 0xc34   : > { %v2222_v33 = vcombine.high %v2220_v27, %v2220_v27  ;;  %v2254_v49 = vcombine.low %v2213_v3, %v2221_v35 }
 0xc36   : > { %v2255_v29 = vcombine.low %v2220_v27, %v2222_v33  ;;  %v2262_v60 = vrot.slane %v2254_v49, %v4570_v36 }
 0xc38   : > { %v2269_v57 = vrot.slane %v2255_v29, %v4570_v36  ;;  %v4306_v29 = vld.sshfl [vmem:[#allocation2 + $0x8] sm:$0x3 pattern:$0x76325410] }
 0xc39   : > { %v2181_v34 = vpop.permute.xlu0 %2180 }
 0xc3a   : > { %v2200_v54 = vsel %vm2197_vm13, %v2195_v32, %v2181_v34  ;;  %v2270_v6 = vcombine.low %v2262_v60, %v2269_v57 }
 0xc3b   : > { %v2230_v44 = vcombine.high %v2200_v54, %v2200_v54  ;;  %v2237_v45 = vrot.slane %v2200_v54, %v4570_v36  ;;  %v2183_v51 = vpop.permute.xlu1 %2182  ;;  %v4305_v54 = vld.sshfl [vmem:[#allocation2 + $0x18] sm:$0x3 pattern:$0x76325410] }
 0xc3d   : > { %v2244_v50 = vrot.slane %v2230_v44, %v4570_v36  ;;  %v2245_v12 = vcombine.high %v2237_v45, %v2237_v45  ;;  %v2179_v58 = vpop.permute.xlu0 %2178 }
 0xc3e   : > { %v2199_v53 = vsel %vm2197_vm13, %v2194_v48, %v2179_v58 }
 0xc3f   : > { %v2272_v30 = vcombine.low %v2245_v12, %v2244_v50  ;;  %v2229_v55 = vrot.slane %v2199_v53, %v4570_v36  ;;  %v2246_v1 = vcombine.high %v2244_v50, %v2244_v50 }
 0xc41   : > { %v2271_v56 = vcombine.low %v2229_v55, %v2237_v45  ;;  %v2167_v19 = vpop.permute.xlu0 %2166  ;;  %v2286_v61 = vrot.slane %v2272_v30, %v4570_v36 }
 0xc42   : > { %v2196_v59 = vsel %vm2192_vm12, %v2191_v14, %v2167_v19  ;;  %v4364_v19 = vmov 269488144  }
 0xc43   : > { %v2279_v62 = vrot.slane %v2271_v56, %v4570_v36  ;;  %v2201_v0 = vsel %vm2197_vm13, %v2196_v59, %v2183_v51  ;;  %v2518_v51 = vunpack.c.l.s4 %v4364_v19  ;;  %v4365_v59 = vmov 842150450  }
 0xc44   : > { %v2253_v2 = vrot.slane %v2201_v0, %v4570_v36  ;;  %v2525_v60 = vunpack.c.l.s4 %v4365_v59  ;;  %v4367_v0 = vmov 1987475062  }
 0xc45   : > { %v2287_v4 = vcombine.low %v2279_v62, %v2286_v61  ;;  %v4366_v61 = vmov 1414812756  }
 0xc46   : > { %v2288_v63 = vcombine.low %v2246_v1, %v2253_v2  ;;  %v2532_v62 = vunpack.c.l.s4 %v4366_v61  ;;  %v2539_v1 = vunpack.c.l.s4 %v4367_v0  ;;  %v2519_v2 = vunpack.c.0.s8 %v2518_v51  ;;  %v4217_v61 = vld [vmem:[%s4508_s17] sm:$0xff]  }
 0xc47   : > { %v2299_v5 = vpack.c.bf16 %v2287_v4, %v2270_v6  ;;  %v2526_v6 = vunpack.c.0.s8 %v2525_v60  ;;  %4142 = vmatprep.subr.bf16.mxu0 %v4217_v61 }
 0xc48   : > { %v2295_v7 = vrot.slane %v2288_v63, %v4570_v36  ;;  %v2533_v4 = vunpack.c.0.s8 %v2532_v62  ;;  %v2540_v63 = vunpack.c.0.s8 %v2539_v1  ;;  %v4218_v62 = vld [vmem:[%s4508_s17 + $0x8] sm:$0xff]   ;;  %4143 = vmatpush3.bf16.msra.mxu0 %v4217_v61 }
 0xc49   : > { %4138 = vmatprep.mubr.msk.bf16.mxu1 %vm984_vm6, %v2299_v5  ;;  %v4873_v5 = vsub.s32 %v2519_v2, %v4567_v31  ;;  %4144 = vmatprep.subr.bf16.mxu0 %v4218_v62 }
 0xc4a   : > { %v2300_v8 = vpack.c.bf16 %v2295_v7, %v2295_v7  ;;  %v4876_v7 = vsub.s32 %v2526_v6, %v4567_v31 }
 0xc4c   : > { %4139 = vmatmul.mubr.msk.bf16.vlgmr.msra.gmra.mrb[32].mxu1 %vm984_vm6, %v2300_v8  ;;  %v4879_v8 = vsub.s32 %v2533_v4, %v4567_v31  ;;  %4145 = vmatpush3.bf16.msra.mxu0 %v4218_v62 }
 0xd1f   : > { %v4140_v10 = vpop.f32.mrb[32].mxu1 }
 0xd20   : > { %v2373_v11 = vadd.f32 %v4140_v10, %v3937_v9  ;;  %v2364_v13 = vpop.f32.mrb[33].mxu1 }
 0xd21   : > { %v2365_v15 = vadd.f32 %v3937_v9, %v2364_v13  ;;  %v4141_v16 = vpop.f32.mrb[34].mxu1 }
 0xd22   : > { %v2421_v17 = vrot.slane %v2373_v11, %v4570_v36  ;;  %v2367_v25 = vpop.f32.mrb[35].mxu1 }
 0xd23   : > { %v2381_v18 = vcombine.high %v2365_v15, %v2365_v15  ;;  %v2388_v20 = vrot.slane %v2365_v15, %v4570_v36  ;;  %v2368_v21 = vadd.f32 %v3937_v9, %v2367_v25  ;;  %v4882_v9 = vsub.s32 %v2540_v63, %v4567_v31 }
 0xd24   : > { %v2422_v22 = vcombine.high %v2421_v17, %v2421_v17 }
 0xd25   : > { %v2395_v23 = vrot.slane %v2381_v18, %v4570_v36  ;;  %v2396_v24 = vcombine.high %v2388_v20, %v2388_v20  ;;  %v2398_v26 = vcombine.high %v2368_v21, %v2368_v21  ;;  %v2405_v27 = vrot.slane %v2368_v21, %v4570_v36 }
 0xd26   : > { %v2433_v28 = vadd.f32 %v2388_v20, %v4573_v37  ;;  %v4849_v35 = vadd.f32 %v4305_v54, %v2422_v22  ;;  %v2441_v37 = vadd.f32 %v2421_v17, %v4599_v46 }
 0xd27   : > { %v2397_v3 = vcombine.high %v2395_v23, %v2395_v23  ;;  %v2434_v32 = vadd.f32 %v2396_v24, %v4586_v41  ;;  %v2412_v33 = vrot.slane %v2398_v26, %v4570_v36  ;;  %v2413_v34 = vcombine.high %v2405_v27, %v2405_v27 }
 0xd28   : > { %v2435_v44 = vadd.f32 %v2395_v23, %v4576_v38  ;;  %v2437_v50 = vadd.f32 %v4306_v29, %v2405_v27  ;;  %v2489_v30 = vcombine.low %v2441_v37, %v4849_v35 }
 0xd29   : > { %v2414_v45 = vcombine.high %v2412_v33, %v2412_v33  ;;  %v2436_v47 = vadd.f32 %v2397_v3, %v4590_v42  ;;  %v2455_v48 = vcombine.low %v2433_v28, %v2434_v32  ;;  %v2438_v12 = vadd.f32 %v2413_v34, %v4579_v39 }
 0xd2a   : > { %v4856_v41 = vadd.f32 %v2412_v33, %v4594_v43 }
 0xd2b   : > { %v2456_v58 = vcombine.low %v2435_v44, %v2436_v47  ;;  %v4859_v52 = vadd.f32 %v2414_v45, %v4582_v40  ;;  %v2472_v53 = vcombine.low %v2437_v50, %v2438_v12  ;;  %v2463_v38 = vrot.slane %v2455_v48, %v4570_v36 }
 0xd2c   : > { %v2496_v40 = vrot.slane %v2489_v30, %v4570_v36 }
 0xd2d   : > { %v2470_v49 = vrot.slane %v2456_v58, %v4570_v36  ;;  %v2473_v42 = vcombine.low %v4856_v41, %v4859_v52  ;;  %v2480_v46 = vrot.slane %v2472_v53, %v4570_v36 }
 0xd2e   : > { %v2507_v56 = vsel %vm2506_vm14, %v2496_v40, 0.0 }
 0xd2f   : > { %v2471_v39 = vcombine.low %v2463_v38, %v2470_v49  ;;  %v2487_v43 = vrot.slane %v2473_v42, %v4570_v36 }
 0xd31   : > { %v2500_v55 = vsel %vm984_vm6, %v2471_v39, 0.0  ;;  %v2488_v57 = vcombine.low %v2480_v46, %v2487_v43 }
 0xd32   : > { %2501 = vadd.xlane.f32.xlu0 %v2500_v55 }
 0xd33   : > { %v2503_v14 = vsel %vm984_vm6, %v2488_v57, 0.0 }
 0xd34   : > { %2504 = vadd.xlane.f32.xlu1 %v2503_v14 }
 0xd36   : > { %2508 = vadd.xlane.f32.xlu0 %v2507_v56 }
 0xdbf   : > { %v2502_v10 = vpop.xlane.xlu0 %2501 }
 0xdc0   : > { %v2511_v11 = vmul.f32 0.03125, %v2502_v10 }
 0xdc1   : > { %v2505_v13 = vpop.xlane.xlu1 %2504 }
 0xdc2   : > { %v2523_v15 = vrot.slane %v2511_v11, %v4873_v5  ;;  %v2530_v16 = vrot.slane %v2511_v11, %v4876_v7  ;;  %v2537_v17 = vrot.slane %v2511_v11, %v4879_v8  ;;  %v2544_v25 = vrot.slane %v2511_v11, %v4882_v9 }
 0xdc3   : > { %v2512_v18 = vmul.f32 0.03125, %v2505_v13  ;;  %v2509_v20 = vpop.xlane.xlu0 %2508  ;;  %v3942_v13 = vld [vmem:[%s751_s18] ss:$0 sm:$0xff] }
 0xdc4   : > { %v2513_v21 = vmul.f32 0.03125, %v2509_v20  ;;  %v4888_v22 = vsub.f32 %v2433_v28, %v2523_v15  ;;  %v4890_v23 = vsub.f32 %v2434_v32, %v2530_v16  ;;  %v4892_v31 = vsub.f32 %v2435_v44, %v2537_v17  ;;  %v3943_v15 = vld [vmem:[%s754_s9] ss:$0 sm:$0xff] }
 0xdc5   : > { %v2551_v24 = vrot.slane %v2512_v18, %v4873_v5  ;;  %v2558_v26 = vrot.slane %v2512_v18, %v4876_v7  ;;  %v2565_v27 = vrot.slane %v2512_v18, %v4879_v8  ;;  %v2572_v3 = vrot.slane %v2512_v18, %v4882_v9 }
 0xdc6   : > { %v2579_v33 = vrot.slane %v2513_v21, %v4873_v5  ;;  %v2586_v34 = vrot.slane %v2513_v21, %v4876_v7  ;;  %v4900_v54 = vsub.f32 %v2436_v47, %v2544_v25  ;;  %v2607_v28 = vmul.f32 %v4888_v22, %v4888_v22 }
 0xdc7   : > { %v2608_v32 = vmul.f32 %v4890_v23, %v4890_v23  ;;  %v2609_v44 = vmul.f32 %v4892_v31, %v4892_v31  ;;  %v4908_v45 = vsub.f32 %v2437_v50, %v2551_v24  ;;  %v4910_v48 = vsub.f32 %v2438_v12, %v2558_v26 }
 0xdc8   : > { %v4912_v29 = vsub.f32 %v2441_v37, %v2579_v33  ;;  %v4915_v58 = vsub.f32 %v4849_v35, %v2586_v34  ;;  %v2610_v47 = vmul.f32 %v4900_v54, %v4900_v54  ;;  %v4920_v53 = vsub.f32 %v4856_v41, %v2565_v27 }
 0xdc9   : > { %v2627_v38 = vcombine.low %v2607_v28, %v2608_v32  ;;  %v4923_v49 = vsub.f32 %v4859_v52, %v2572_v3  ;;  %v2611_v50 = vmul.f32 %v4908_v45, %v4908_v45  ;;  %v2612_v12 = vmul.f32 %v4910_v48, %v4910_v48 }
 0xdca   : > { %v2628_v37 = vcombine.low %v2609_v44, %v2610_v47  ;;  %v2613_v35 = vmul.f32 %v4920_v53, %v4920_v53  ;;  %v2615_v42 = vmul.f32 %v4912_v29, %v4912_v29  ;;  %v2616_v41 = vmul.f32 %v4915_v58, %v4915_v58 }
 0xdcb   : > { %v2635_v30 = vrot.slane %v2627_v38, %v4570_v36  ;;  %v2614_v52 = vmul.f32 %v4923_v49, %v4923_v49  ;;  %v2644_v39 = vcombine.low %v2611_v50, %v2612_v12  ;;  %v2788_v17 = vcombine.high %v3942_v13, %v3942_v13 }
 0xdcc   : > { %v2642_v46 = vrot.slane %v2628_v37, %v4570_v36  ;;  %v2661_v43 = vcombine.low %v2615_v42, %v2616_v41  ;;  %v2824_v25 = vcombine.high %v3943_v15, %v3943_v15  ;;  %v2795_v18 = vrot.slane %v3942_v13, %v4570_v36 }
 0xdcd   : > { %v2645_v55 = vcombine.low %v2613_v35, %v2614_v52  ;;  %v2652_v57 = vrot.slane %v2644_v39, %v4570_v36  ;;  %v2802_v20 = vrot.slane %v2788_v17, %v4570_v36  ;;  %v2831_v21 = vrot.slane %v3943_v15, %v4570_v36 }
 0xdce   : > { %v2643_v40 = vcombine.low %v2635_v30, %v2642_v46  ;;  %v2668_v19 = vrot.slane %v2661_v43, %v4570_v36  ;;  %v2838_v24 = vrot.slane %v2824_v25, %v4570_v36  ;;  %v2803_v27 = vcombine.high %v2795_v18, %v2795_v18 }
 0xdcf   : > { %v2659_v14 = vrot.slane %v2645_v55, %v4570_v36  ;;  %v2804_v32 = vcombine.high %v2802_v20, %v2802_v20  ;;  %v2839_v44 = vcombine.high %v2831_v21, %v2831_v21 }
 0xdd0   : > { %v2672_v56 = vsel %vm984_vm6, %v2643_v40, 0.0  ;;  %v2678_v60 = vsel %vm2506_vm14, %v2668_v19, 0.0  ;;  %v2840_v47 = vcombine.high %v2838_v24, %v2838_v24 }
 0xdd1   : > { %2673 = vadd.xlane.f32.xlu0 %v2672_v56  ;;  %v2660_v51 = vcombine.low %v2652_v57, %v2659_v14 }
 0xdd3   : > { %v2675_v59 = vsel %vm984_vm6, %v2660_v51, 0.0 }
 0xdd4   : > { %2676 = vadd.xlane.f32.xlu1 %v2675_v59 }
 0xdd5   : > { %2679 = vadd.xlane.f32.xlu0 %v2678_v60 }
 0xe5e   : > { %v2674_v0 = vpop.xlane.xlu0 %2673 }
 0xe5f   : > { %v2681_v1 = vmul.f32 0.03125, %v2674_v0 }
 0xe61   : > { %v2684_v2 = vadd.f32 1e-05, %v2681_v1  ;;  %v2677_v6 = vpop.xlane.xlu1 %2676 }
 0xe62   : > { %v2682_v4 = vmul.f32 0.03125, %v2677_v6  ;;  %v2680_v63 = vpop.xlane.xlu0 %2679 }
 0xe63   : > { %4287 = vrsqrt.f32 %v2684_v2  ;;  %v2683_v10 = vmul.f32 0.03125, %v2680_v63 }
 0xe64   : > { %v2685_v11 = vadd.f32 1e-05, %v2682_v4 }
 0xe65   : > { %v2686_v16 = vadd.f32 1e-05, %v2683_v10 }
 0xe66   : > { %4289 = vrsqrt.f32 %v2685_v11 }
 0xe67   : > { %4291 = vrsqrt.f32 %v2686_v16 }
 0xe6d   : > { %v4288_v26 = vpop.eup %4287 }
 0xe6e   : > { %v2699_v3 = vrot.slane %v4288_v26, %v4873_v5  ;;  %v2706_v33 = vrot.slane %v4288_v26, %v4876_v7  ;;  %v2713_v34 = vrot.slane %v4288_v26, %v4879_v8  ;;  %v2720_v28 = vrot.slane %v4288_v26, %v4882_v9 }
 0xe70   : > { %v4290_v38 = vpop.eup %4289  ;;  %v2773_v50 = vmul.f32 %v2699_v3, %v4888_v22  ;;  %v2774_v12 = vmul.f32 %v2706_v33, %v4890_v23  ;;  %v2775_v37 = vmul.f32 %v2713_v34, %v4892_v31  ;;  %v2776_v35 = vmul.f32 %v2720_v28, %v4900_v54  ;;  %v4219_v3 = vld [vmem:[%s4518_s3] sm:$0xff]   ;;  %v4220_v33 = vld [vmem:[%s4518_s3 + $0x8] sm:$0xff]   ;;  %v4221_v34 = vld [vmem:[%s4518_s3 + $0x10] sm:$0xff]  }
 0xe71   : > { %v4292_v42 = vpop.eup %4291  ;;  %v2727_v41 = vrot.slane %v4290_v38, %v4873_v5  ;;  %v2734_v30 = vrot.slane %v4290_v38, %v4876_v7  ;;  %v2741_v52 = vrot.slane %v4290_v38, %v4879_v8  ;;  %v2748_v39 = vrot.slane %v4290_v38, %v4882_v9  ;;  %4150 = vmatprep.subr.bf16.mxu1 %v4219_v3  ;;  %v4222_v28 = vld [vmem:[%s4518_s3 + $0x18] sm:$0xff]   ;;  %s5256_s3 = sld [smem:[#allocation16_spill]] (!%p3958_p5) }
 0xe72   : > { %v2755_v46 = vrot.slane %v4292_v42, %v4873_v5  ;;  %v2762_v43 = vrot.slane %v4292_v42, %v4876_v7  ;;  %v2809_v22 = vmul.f32 %v2795_v18, %v2773_v50  ;;  %v2810_v55 = vmul.f32 %v2803_v27, %v2774_v12  ;;  %4151 = vmatpush3.bf16.msra.mxu1 %v4219_v3 }
 0xe73   : > { %v2777_v23 = vmul.f32 %v2727_v41, %v4908_v45  ;;  %v2778_v31 = vmul.f32 %v2734_v30, %v4910_v48  ;;  %v2779_v54 = vmul.f32 %v2741_v52, %v4920_v53  ;;  %v2780_v57 = vmul.f32 %v2748_v39, %v4923_v49  ;;  %4152 = vmatprep.subr.bf16.mxu1 %v4220_v33 }
 0xe74   : > { %v2781_v40 = vmul.f32 %v2755_v46, %v4912_v29  ;;  %v2782_v14 = vmul.f32 %v2762_v43, %v4915_v58  ;;  %v2811_v56 = vmul.f32 %v2802_v20, %v2775_v37  ;;  %v2812_v19 = vmul.f32 %v2804_v32, %v2776_v35 }
 0xe75   : > { %v2813_v51 = vmul.f32 %v2795_v18, %v2777_v23  ;;  %v2814_v59 = vmul.f32 %v2803_v27, %v2778_v31  ;;  %v2815_v60 = vmul.f32 %v2802_v20, %v2779_v54  ;;  %v2816_v61 = vmul.f32 %v2804_v32, %v2780_v57  ;;  %v3944_v32 = vld [vmem:[%s5254_s10] ss:$0 sm:$0xff] }
 0xe76   : > { %v2817_v62 = vmul.f32 %v2795_v18, %v2781_v40  ;;  %v2818_v0 = vmul.f32 %v2803_v27, %v2782_v14  ;;  %v4981_v1 = vadd.f32 %v2831_v21, %v2809_v22  ;;  %v4983_v45 = vadd.f32 %v2839_v44, %v2810_v55  ;;  %4153 = vmatpush3.bf16.msra.mxu1 %v4220_v33 }
 0xe77   : > { %v4985_v48 = vadd.f32 %v2838_v24, %v2811_v56  ;;  %v4987_v53 = vadd.f32 %v2840_v47, %v2812_v19  ;;  %v4989_v49 = vadd.f32 %v2831_v21, %v2813_v51  ;;  %v4991_v29 = vadd.f32 %v2839_v44, %v2814_v59  ;;  %4154 = vmatprep.subr.bf16.mxu1 %v4221_v34  ;;  %v3949_v51 = vld [vmem:[%s748_s28] ss:$0 sm:$0xff] }
 0xe78   : > { %v4993_v58 = vadd.f32 %v2838_v24, %v2815_v60  ;;  %v4995_v2 = vadd.f32 %v2840_v47, %v2816_v61  ;;  %v2865_v6 = vcombine.low %v4981_v1, %v4983_v45  ;;  %v4999_v4 = vadd.f32 %v2831_v21, %v2817_v62 }
 0xe79   : > { %v2866_v63 = vcombine.low %v4985_v48, %v4987_v53  ;;  %v2882_v10 = vcombine.low %v4989_v49, %v4991_v29  ;;  %v5005_v11 = vadd.f32 %v2839_v44, %v2818_v0 }
 0xe7a   : > { %v2873_v13 = vrot.slane %v2865_v6, %v4570_v36  ;;  %v2883_v15 = vcombine.low %v4993_v58, %v4995_v2  ;;  %4155 = vmatpush3.bf16.msra.mxu1 %v4221_v34 }
 0xe7b   : > { %v2880_v16 = vrot.slane %v2866_v63, %v4570_v36  ;;  %v2890_v17 = vrot.slane %v2882_v10, %v4570_v36  ;;  %v2899_v25 = vcombine.low %v4999_v4, %v5005_v11  ;;  %4156 = vmatprep.subr.bf16.mxu1 %v4222_v28 }
 0xe7c   : > { %v2897_v18 = vrot.slane %v2883_v15, %v4570_v36 }
 0xe7d   : > { %v2906_v20 = vrot.slane %v2899_v25, %v4570_v36  ;;  %v2881_v21 = vcombine.low %v2873_v13, %v2880_v16 }
 0xe7e   : > { %v2898_v24 = vcombine.low %v2890_v17, %v2897_v18  ;;  %4157 = vmatpush3.bf16.msra.mxu1 %v4222_v28 }
 0xe7f   : > { %v2911_v26 = vpack.c.bf16 %v2906_v20, %v2906_v20 }
 0xe80   : > { %v2910_v27 = vpack.c.bf16 %v2898_v24, %v2881_v21 }
 0xe82   : > { %4146 = vmatprep.mubr.msk.bf16.mxu0 %vm984_vm6, %v2910_v27 }
 0xe83   : > { %4147 = vmatmul.mubr.msk.bf16.vlgmr.msra.gmra.mrb[36].mxu0 %vm984_vm6, %v2911_v26 }
 0xf56   : > { %v4148_v44 = vpop.f32.mrb[36].mxu0 }
 0xf57   : > { %v2984_v47 = vadd.f32 %v4148_v44, %v3944_v32  ;;  %v2975_v38 = vpop.f32.mrb[37].mxu0 }
 0xf58   : > { %v2976_v50 = vadd.f32 %v3944_v32, %v2975_v38  ;;  %v4149_v12 = vpop.f32.mrb[38].mxu0 }
 0xf59   : > { %v2994_v37 = vmul.f32 0.70710677, %v2984_v47  ;;  %v2978_v35 = vpop.f32.mrb[39].mxu0  ;;  %v2991_v55 = vmul.f32 0.5, %v2984_v47 }
 0xf5a   : > { %v2992_v42 = vmul.f32 0.70710677, %v2976_v50  ;;  %v2979_v41 = vadd.f32 %v3944_v32, %v2978_v35  ;;  %v2989_v23 = vmul.f32 0.5, %v2976_v50 }
 0xf5b   : > { %4293 = verf.f32 %v2994_v37 }
 0xf5c   : > { %4295 = verf.f32 %v2992_v42  ;;  %v2993_v30 = vmul.f32 0.70710677, %v2979_v41  ;;  %v2990_v31 = vmul.f32 0.5, %v2979_v41 }
 0xf5e   : > { %4297 = verf.f32 %v2993_v30 }
 0xf65   : > { %v4294_v52 = vpop.eup %4293 }
 0xf66   : > { %v4296_v39 = vpop.eup %4295  ;;  %v3000_v46 = vadd.f32 1.0, %v4294_v52 }
 0xf67   : > { %v2998_v43 = vadd.f32 1.0, %v4296_v39 }
 0xf68   : > { %v4298_v22 = vpop.eup %4297  ;;  %v3003_v57 = vmul.f32 %v3000_v46, %v2991_v55 }
 0xf69   : > { %v2999_v54 = vadd.f32 1.0, %v4298_v22  ;;  %v3001_v40 = vmul.f32 %v2998_v43, %v2989_v23 }
 0xf6a   : > { %v3005_v19 = vpack.c.bf16 %v3003_v57, %v3003_v57 }
 0xf6b   : > { %v3002_v14 = vmul.f32 %v2999_v54, %v2990_v31 }
 0xf6d   : > { %v3004_v56 = vpack.c.bf16 %v3002_v14, %v3001_v40 }
 0xf6f   : > { %4158 = vmatprep.mubr.msk.bf16.mxu1 %vm3045_vm15, %v3004_v56 }
 0xf70   : > { %4159 = vmatmul.mubr.msk.bf16.vlgmr.msra.gmra.mrb[36].mxu1 %vm3045_vm15, %v3005_v19 }
0x1043   : > { %v4160_v59 = vpop.f32.mrb[36].mxu1 }
0x1044   : > { %v3095_v60 = vadd.f32 %v4160_v59, %v3949_v51  ;;  %v3086_v61 = vpop.f32.mrb[37].mxu1 }
0x1045   : > { %v3087_v62 = vadd.f32 %v3949_v51, %v3086_v61  ;;  %v4161_v0 = vpop.f32.mrb[38].mxu1 }
0x1046   : > { %v3143_v6 = vrot.slane %v3095_v60, %v4570_v36  ;;  %v3089_v63 = vpop.f32.mrb[39].mxu1 }
0x1047   : > { %v3103_v10 = vcombine.high %v3087_v62, %v3087_v62  ;;  %v3110_v13 = vrot.slane %v3087_v62, %v4570_v36  ;;  %v3090_v15 = vadd.f32 %v3949_v51, %v3089_v63 }
0x1048   : > { %v3144_v16 = vcombine.high %v3143_v6, %v3143_v6  ;;  %v3163_v50 = vadd.f32 %v3143_v6, %v4999_v4 }
0x1049   : > { %v3117_v17 = vrot.slane %v3103_v10, %v4570_v36  ;;  %v3118_v25 = vcombine.high %v3110_v13, %v3110_v13  ;;  %v3120_v18 = vcombine.high %v3090_v15, %v3090_v15  ;;  %v3127_v20 = vrot.slane %v3090_v15, %v4570_v36 }
0x104a   : > { %v3155_v24 = vadd.f32 %v3110_v13, %v4981_v1  ;;  %v3164_v33 = vadd.f32 %v3144_v16, %v5005_v11 }
0x104b   : > { %v3119_v21 = vcombine.high %v3117_v17, %v3117_v17  ;;  %v3156_v26 = vadd.f32 %v3118_v25, %v4983_v45  ;;  %v3134_v27 = vrot.slane %v3120_v18, %v4570_v36  ;;  %v3135_v3 = vcombine.high %v3127_v20, %v3127_v20 }
0x104c   : > { %v3157_v34 = vadd.f32 %v3117_v17, %v4985_v48  ;;  %v3159_v47 = vadd.f32 %v3127_v20, %v4989_v49  ;;  %v3211_v42 = vcombine.low %v3163_v50, %v3164_v33 }
0x104d   : > { %v3136_v28 = vcombine.high %v3134_v27, %v3134_v27  ;;  %v3158_v32 = vadd.f32 %v3119_v21, %v4987_v53  ;;  %v3177_v44 = vcombine.low %v3155_v24, %v3156_v26  ;;  %v3160_v38 = vadd.f32 %v3135_v3, %v4991_v29 }
0x104e   : > { %v3161_v1 = vadd.f32 %v3134_v27, %v4993_v58  ;;  %v3218_v58 = vrot.slane %v3211_v42, %v4570_v36 }
0x104f   : > { %v3178_v45 = vcombine.low %v3157_v34, %v3158_v32  ;;  %v3162_v12 = vadd.f32 %v3136_v28, %v4995_v2  ;;  %v3194_v37 = vcombine.low %v3159_v47, %v3160_v38  ;;  %v3185_v11 = vrot.slane %v3177_v44, %v4570_v36 }
0x1050   : > { %v3228_v30 = vsel %vm2506_vm14, %v3218_v58, 0.0  ;;  %v3956_v58 = vld [vmem:[%s757_s23] ss:$0 sm:$0xff] }
0x1051   : > { %v3192_v48 = vrot.slane %v3178_v45, %v4570_v36  ;;  %v3195_v35 = vcombine.low %v3161_v1, %v3162_v12  ;;  %v3202_v41 = vrot.slane %v3194_v37, %v4570_v36 }
0x1053   : > { %v3193_v53 = vcombine.low %v3185_v11, %v3192_v48  ;;  %v3209_v49 = vrot.slane %v3195_v35, %v4570_v36 }
0x1055   : > { %v3222_v29 = vsel %vm984_vm6, %v3193_v53, 0.0  ;;  %v3210_v4 = vcombine.low %v3202_v41, %v3209_v49 }
0x1056   : > { %3223 = vadd.xlane.f32.xlu1 %v3222_v29 }
0x1057   : > { %v3225_v2 = vsel %vm984_vm6, %v3210_v4, 0.0 }
0x1058   : > { %3226 = vadd.xlane.f32.xlu0 %v3225_v2 }
0x105a   : > { %3229 = vadd.xlane.f32.xlu1 %v3228_v30 }
0x10e3   : > { %v3224_v52 = vpop.xlane.xlu1 %3223 }
0x10e4   : > { %v3231_v39 = vmul.f32 0.03125, %v3224_v52 }
0x10e5   : > { %v3227_v46 = vpop.xlane.xlu0 %3226 }
0x10e6   : > { %v3243_v43 = vrot.slane %v3231_v39, %v4873_v5  ;;  %v3250_v22 = vrot.slane %v3231_v39, %v4876_v7  ;;  %v3257_v55 = vrot.slane %v3231_v39, %v4879_v8  ;;  %v3264_v23 = vrot.slane %v3231_v39, %v4882_v9  ;;  %v3957_v39 = vld [vmem:[%s760_s2] ss:$0 sm:$0xff]  ;;  %s5255_s2 = sld [smem:[#allocation15_spill]] (!%p3958_p5) }
0x10e7   : > { %v3232_v31 = vmul.f32 0.03125, %v3227_v46  ;;  %v3230_v54 = vpop.xlane.xlu1 %3229  ;;  %v3508_v46 = vcombine.high %v3956_v58, %v3956_v58 }
0x10e8   : > { %v3233_v57 = vmul.f32 0.03125, %v3230_v54  ;;  %v5059_v40 = vsub.f32 %v3155_v24, %v3243_v43  ;;  %v5061_v14 = vsub.f32 %v3156_v26, %v3250_v22  ;;  %v5063_v56 = vsub.f32 %v3157_v34, %v3257_v55 }
0x10e9   : > { %v3271_v19 = vrot.slane %v3232_v31, %v4873_v5  ;;  %v3278_v51 = vrot.slane %v3232_v31, %v4876_v7  ;;  %v3285_v59 = vrot.slane %v3232_v31, %v4879_v8  ;;  %v3292_v60 = vrot.slane %v3232_v31, %v4882_v9 }
0x10ea   : > { %v3299_v61 = vrot.slane %v3233_v57, %v4873_v5  ;;  %v3306_v62 = vrot.slane %v3233_v57, %v4876_v7  ;;  %v5071_v0 = vsub.f32 %v3158_v32, %v3264_v23  ;;  %v3327_v6 = vmul.f32 %v5059_v40, %v5059_v40 }
0x10eb   : > { %v3328_v63 = vmul.f32 %v5061_v14, %v5061_v14  ;;  %v3329_v10 = vmul.f32 %v5063_v56, %v5063_v56  ;;  %v5079_v13 = vsub.f32 %v3159_v47, %v3271_v19  ;;  %v5081_v15 = vsub.f32 %v3160_v38, %v3278_v51 }
0x10ec   : > { %v5083_v16 = vsub.f32 %v3163_v50, %v3299_v61  ;;  %v5085_v17 = vsub.f32 %v3164_v33, %v3306_v62  ;;  %v3330_v25 = vmul.f32 %v5071_v0, %v5071_v0  ;;  %v5089_v18 = vsub.f32 %v3161_v1, %v3285_v59 }
0x10ed   : > { %v3347_v20 = vcombine.low %v3327_v6, %v3328_v63  ;;  %v5091_v21 = vsub.f32 %v3162_v12, %v3292_v60  ;;  %v3331_v24 = vmul.f32 %v5079_v13, %v5079_v13  ;;  %v3332_v26 = vmul.f32 %v5081_v15, %v5081_v15 }
0x10ee   : > { %v3348_v27 = vcombine.low %v3329_v10, %v3330_v25  ;;  %v3333_v3 = vmul.f32 %v5089_v18, %v5089_v18  ;;  %v3335_v33 = vmul.f32 %v5083_v16, %v5083_v16  ;;  %v3336_v34 = vmul.f32 %v5085_v17, %v5085_v17 }
0x10ef   : > { %v3355_v28 = vrot.slane %v3347_v20, %v4570_v36  ;;  %v3334_v32 = vmul.f32 %v5091_v21, %v5091_v21  ;;  %v3364_v44 = vcombine.low %v3331_v24, %v3332_v26  ;;  %v3544_v22 = vcombine.high %v3957_v39, %v3957_v39 }
0x10f0   : > { %v3362_v47 = vrot.slane %v3348_v27, %v4570_v36  ;;  %v3381_v38 = vcombine.low %v3335_v33, %v3336_v34  ;;  %v3515_v55 = vrot.slane %v3956_v58, %v4570_v36  ;;  %v3522_v23 = vrot.slane %v3508_v46, %v4570_v36 }
0x10f1   : > { %v3365_v50 = vcombine.low %v3333_v3, %v3334_v32  ;;  %v3372_v1 = vrot.slane %v3364_v44, %v4570_v36  ;;  %v3551_v31 = vrot.slane %v3957_v39, %v4570_v36  ;;  %v3558_v54 = vrot.slane %v3544_v22, %v4570_v36 }
0x10f2   : > { %v3363_v45 = vcombine.low %v3355_v28, %v3362_v47  ;;  %v3388_v11 = vrot.slane %v3381_v38, %v4570_v36  ;;  %v3523_v19 = vcombine.high %v3515_v55, %v3515_v55  ;;  %v3524_v51 = vcombine.high %v3522_v23, %v3522_v23 }
0x10f3   : > { %v3379_v12 = vrot.slane %v3365_v50, %v4570_v36  ;;  %v3559_v6 = vcombine.high %v3551_v31, %v3551_v31  ;;  %v3560_v63 = vcombine.high %v3558_v54, %v3558_v54 }
0x10f4   : > { %v3392_v37 = vsel %vm984_vm6, %v3363_v45, 0.0  ;;  %v3398_v42 = vsel %vm2506_vm14, %v3388_v11, 0.0 }
0x10f5   : > { %3393 = vadd.xlane.f32.xlu0 %v3392_v37  ;;  %v3380_v48 = vcombine.low %v3372_v1, %v3379_v12 }
0x10f7   : > { %v3395_v35 = vsel %vm984_vm6, %v3380_v48, 0.0 }
0x10f8   : > { %3396 = vadd.xlane.f32.xlu1 %v3395_v35 }
0x10f9   : > { %3399 = vadd.xlane.f32.xlu0 %v3398_v42 }
0x1182   : > { %v3394_v53 = vpop.xlane.xlu0 %3393 }
0x1183   : > { %v3401_v41 = vmul.f32 0.03125, %v3394_v53 }
0x1185   : > { %v3404_v49 = vadd.f32 1e-05, %v3401_v41  ;;  %v3397_v29 = vpop.xlane.xlu1 %3396 }
0x1186   : > { %v3402_v4 = vmul.f32 0.03125, %v3397_v29  ;;  %v3400_v2 = vpop.xlane.xlu0 %3399 }
0x1187   : > { %4299 = vrsqrt.f32 %v3404_v49  ;;  %v3403_v30 = vmul.f32 0.03125, %v3400_v2 }
0x1188   : > { %v3405_v52 = vadd.f32 1e-05, %v3402_v4 }
0x1189   : > { %v3406_v43 = vadd.f32 1e-05, %v3403_v30 }
0x118a   : > { %4301 = vrsqrt.f32 %v3405_v52 }
0x118b   : > { %4303 = vrsqrt.f32 %v3406_v43 }
0x1191   : > { %v4300_v57 = vpop.eup %4299 }
0x1192   : > { %v3419_v59 = vrot.slane %v4300_v57, %v4873_v5  ;;  %v3426_v60 = vrot.slane %v4300_v57, %v4876_v7  ;;  %v3433_v61 = vrot.slane %v4300_v57, %v4879_v8  ;;  %v3440_v62 = vrot.slane %v4300_v57, %v4882_v9 }
0x1194   : > { %v4302_v10 = vpop.eup %4301  ;;  %v3493_v25 = vmul.f32 %v3419_v59, %v5059_v40  ;;  %v3494_v20 = vmul.f32 %v3426_v60, %v5061_v14  ;;  %v3495_v24 = vmul.f32 %v3433_v61, %v5063_v56  ;;  %v3496_v26 = vmul.f32 %v3440_v62, %v5071_v0  ;;  %v3686_v59 = vld [vmem:[%s5255_s2 + $0x18] sm:$0xff] (!%p3958_p5) }
0x1195   : > { %v4304_v27 = vpop.eup %4303  ;;  %v3447_v3 = vrot.slane %v4302_v10, %v4873_v5  ;;  %v3454_v33 = vrot.slane %v4302_v10, %v4876_v7  ;;  %v3461_v34 = vrot.slane %v4302_v10, %v4879_v8  ;;  %v3468_v28 = vrot.slane %v4302_v10, %v4882_v9 }
0x1196   : > { %v3529_v32 = vmul.f32 %v3515_v55, %v3493_v25  ;;  %v3530_v44 = vmul.f32 %v3523_v19, %v3494_v20  ;;  %v3531_v47 = vmul.f32 %v3522_v23, %v3495_v24  ;;  %v3532_v40 = vmul.f32 %v3524_v51, %v3496_v26 }
0x1197   : > { %v3475_v14 = vrot.slane %v4304_v27, %v4873_v5  ;;  %v3482_v56 = vrot.slane %v4304_v27, %v4876_v7  ;;  %v3497_v0 = vmul.f32 %v3447_v3, %v5079_v13  ;;  %v3498_v38 = vmul.f32 %v3454_v33, %v5081_v15  ;;  %v3959_v27 = vld [vmem:[%s5256_s3] ss:$0 sm:$0xff] (!%p3958_p5) }
0x1198   : > { %v3565_v50 = vadd.f32 %v3551_v31, %v3529_v32  ;;  %v3566_v1 = vadd.f32 %v3559_v6, %v3530_v44  ;;  %v3567_v45 = vadd.f32 %v3558_v54, %v3531_v47  ;;  %v3568_v12 = vadd.f32 %v3560_v63, %v3532_v40 }
0x1199   : > { %v3499_v8 = vmul.f32 %v3461_v34, %v5089_v18  ;;  %v3500_v9 = vmul.f32 %v3468_v28, %v5091_v21  ;;  %v3501_v37 = vmul.f32 %v3475_v14, %v5083_v16  ;;  %v3502_v11 = vmul.f32 %v3482_v56, %v5085_v17 }
0x119a   : > { %v3585_v48 = vcombine.low %v3565_v50, %v3566_v1  ;;  %v3586_v5 = vcombine.low %v3567_v45, %v3568_v12  ;;  %v3533_v35 = vmul.f32 %v3515_v55, %v3497_v0  ;;  %v3534_v7 = vmul.f32 %v3523_v19, %v3498_v38 }
0x119b   : > { %v3535_v42 = vmul.f32 %v3522_v23, %v3499_v8  ;;  %v3536_v13 = vmul.f32 %v3524_v51, %v3500_v9  ;;  %v3537_v53 = vmul.f32 %v3515_v55, %v3501_v37  ;;  %v3538_v15 = vmul.f32 %v3523_v19, %v3502_v11  ;;  %v3683_v55 = vld [vmem:[%s5255_s2] sm:$0xff] (!%p3958_p5)  ;;  %v3684_v23 = vld [vmem:[%s5255_s2 + $0x8] sm:$0xff] (!%p3958_p5) }
0x119c   : > { %v3593_v41 = vrot.slane %v3585_v48, %v4570_v36  ;;  %v3600_v49 = vrot.slane %v3586_v5, %v4570_v36  ;;  %v3569_v29 = vadd.f32 %v3551_v31, %v3533_v35  ;;  %v3570_v18 = vadd.f32 %v3559_v6, %v3534_v7 }
0x119d   : > { %v3571_v4 = vadd.f32 %v3558_v54, %v3535_v42  ;;  %v3572_v21 = vadd.f32 %v3560_v63, %v3536_v13  ;;  %v3573_v58 = vadd.f32 %v3551_v31, %v3537_v53  ;;  %v3574_v16 = vadd.f32 %v3559_v6, %v3538_v15  ;;  %v3685_v31 = vld [vmem:[%s5255_s2 + $0x10] sm:$0xff] (!%p3958_p5) }
0x119e   : > { %v3601_v2 = vcombine.low %v3593_v41, %v3600_v49  ;;  %v3608_v17 = vrot.slane %v3569_v29, %v4570_v36  ;;  %v3646_v54 = vcombine.low (!%p3958_p5), %v3566_v1, %v3567_v45  ;;  %v3647_v57 = vcombine.low (!%p3958_p5), %v3568_v12, %v3569_v29 }
0x119f   : > { %v3609_v30 = vcombine.low %v3570_v18, %v3571_v4  ;;  %v3610_v52 = vcombine.low %v3572_v21, %v3573_v58  ;;  %v3632_v39 = vrot.slane %v3574_v16, %v4570_v36  ;;  %3645 = sbr.rel (%p3958_p5) target bundleno = 4738 (0x1282), region = 104  ;;  %v4368_v19 = vmov (!%p3958_p5), 0.0  }
0x11a0   : > { %3637 = vst.msk [vmem:[#allocation2] sm:$0xff] %vm984_vm6, %v3601_v2  ;;  %4162 = vmatprep.subr.bf16.mxu0 (!%p3958_p5), %v4368_v19  ;;  %v3687_v51 = vpack.c.bf16 (!%p3958_p5), %v3684_v23, %v3683_v55  ;;  %4166 = vmatprep.mubr.msk.bf16.mxu0 (!%p3958_p5), %vm4369_vm1, %v4368_v19  ;;  %v3663_v60 = vcombine.low (!%p3958_p5), %v3571_v4, %v3572_v21 }
0x11a1   : > { %3639 = vst.msk [vmem:[#allocation2 + $0x8] sm:$0x3] %vm3638_vm0, %v3608_v17  ;;  %v3617_v46 = vrot.slane %v3609_v30, %v4570_v36  ;;  %v3624_v43 = vrot.slane %v3610_v52, %v4570_v36  ;;  %3641 = vst.msk [vmem:[#allocation2 + $0x18] sm:$0x3] %vm3638_vm0, %v3632_v39  ;;  %v3664_v61 = vcombine.low (!%p3958_p5), %v3573_v58, %v3574_v16 }
0x11a2   : > { %v3654_v62 = vrot.slane (!%p3958_p5), %v3646_v54, %v4570_v36  ;;  %v3661_v6 = vrot.slane (!%p3958_p5), %v3647_v57, %v4570_v36  ;;  %4163 = vmatpush3.bf16.msra.mxu0 (!%p3958_p5), %v3687_v51  ;;  %v3688_v63 = vpack.c.bf16 (!%p3958_p5), %v3686_v59, %v3685_v31  ;;  %v3671_v10 = vrot.slane (!%p3958_p5), %v3663_v60, %v4570_v36 }
0x11a3   : > { %v3625_v22 = vcombine.low %v3617_v46, %v3624_v43  ;;  %v3678_v25 = vrot.slane (!%p3958_p5), %v3664_v61, %v4570_v36  ;;  %4164 = vmatprep.subr.bf16.mxu0 (!%p3958_p5), %v4368_v19 }
0x11a4   : > { %v3662_v20 = vcombine.low (!%p3958_p5), %v3654_v62, %v3661_v6 }
0x11a5   : > { %3640 = vst.msk [vmem:[#allocation2 + $0x10] sm:$0xff] %vm984_vm6, %v3625_v22  ;;  %v3679_v24 = vcombine.low (!%p3958_p5), %v3671_v10, %v3678_v25 }
0x11a6   : > { %4165 = vmatpush3.bf16.msra.mxu0 %v3688_v63 }
0x11a7   : > { %v3682_v26 = vpack.c.bf16 %v3679_v24, %v3662_v20 }
0x11a9   : > { %4167 = vmatmul.mubr.msk.bf16.vlgmr.msra.gmra.mrb[0].mxu0 %vm984_vm6, %v3682_v26 }
0x127c   : > { %v3733_v3 = vpop.f32.mrb[0].mxu0 }
0x127d   : > { %v3734_v33 = vadd.f32 %v3959_v27, %v3733_v3  ;;  %v4168_v34 = vpop.f32.mrb[1].mxu0 }
0x127e   : > { %v3736_v28 = vpop.f32.mrb[2].mxu0 }
0x127f   : > { %3741 = vst.msk [vmem:[#allocation3] sm:$0xff] %vm3740_vm2, %v3734_v33  ;;  %v3737_v32 = vadd.f32 %v3959_v27, %v3736_v28  ;;  %v4169_v44 = vpop.f32.mrb[3].mxu0 }
0x1281   : > { %3742 = vst.msk [vmem:[#allocation3 + $0x8] sm:$0xff] %vm3740_vm2, %v3737_v32 }
0x1282 PF: > { %p4174_p6 = scmp.eq.s32.totalorder %s4478_s30, 1  ;;  %s4370_s22 = smov [#allocation3]  }
0x1283   : > { %s3749_s28 = sshll.u32 %s4370_s22, 4  ;;  %s3750_s28 = int_to_ptr.vmem [resolvable:$true] %s3749_s28 }
0x1284   : > { %s4307_s27 = scalar_lea.vmem %s3750_s28, 256  ;;  %p4314_p10 = scmp.lt.s32.totalorder %s3750_s28, %s3750_s28 }
0x1285   : > { %p4308_p7 = scmp.ne.s32.totalorder %s3750_s28, %s4307_s27  ;;  %p4315_p11 = scmp.lt.s32.totalorder %s4307_s27, %s4307_s27 }
0x1287   : > { %p4309_p8 = pnand %p4308_p7, %p4174_p6  ;;  %p4316_p12 = por %p4315_p11, %p4314_p10 }
0x1289   : > { %p4310_p9 = pneg %p4309_p8 }
0x128b   : > { %p4317_p13 = pnand %p4316_p12, %p4310_p9 }
0x128d   : > { %4320 = shalt.err (!%p4317_p13)
}
0x128e   : > { %s5257_s20 = sld [smem:[#allocation17_spill]] }
0x1294   : > { %s4321_s23 = scalar_lea.hbm %s5257_s20, 256 }
0x1295   : > { %p4322_p0 = scmp.ne.s32.totalorder %s5257_s20, %s4321_s23  ;;  %p4327_p3 = scmp.lt.u32.totalorder %s4321_s23, %s5257_s20 }
0x1297   : > { %p4323_p1 = pnand %p4322_p0, %p4174_p6 }
0x1299   : > { %p4324_p2 = pneg %p4323_p1 }
0x129b   : > { %p4329_p4 = pnand %p4327_p3, %p4324_p2 }
0x129d   : > { %4332 = shalt.err (!%p4329_p4)
}
0x129e   : > { %s4371_s9 = smov 128  }
0x129f   : > { %4171 = dma.vmem_to_hbm [thread:$0]  (%p4174_p6), %s3750_s28, 256, %s5257_s20, [#allocation4], %s4371_s9, %s4371_s9, %s4361_s19  }
0x12a0   : > { %4338 = dma.done.wait (%p4174_p6), [#allocation4], 256  }
0x12a1   : > { %4340 = vsyncadd (%p4174_p6), [#allocation4], 4294967040 }
0x12a2 PF: > { %s5258_s10 = sld [smem:[#allocation6_spill]] }
0x12a8   : > { %s30_s0 = sadd.s32 1, %s5258_s10  }
0x12a9   : > { %p27_p5 = scmp.ge.s32.totalorder %s30_s0, 4  }
0x12ab   :  { %29 = sbr.rel (!%p27_p5) target bundleno = 13 (0xd), region = 164 }
0x12b2   :  { %3765 = vsyncpa [#allocation4], 1 }
0x12b3   :  { %3767 = vsyncpa [#allocation4 + $0x1], 1 }

</bundles_post_ra>
